<compile_context>
chip_gen: v7x
topology: tpu7x:2x2x1
jax: 0.10.0
libtpu: 0.0.40
codegen_flags: <defaults>
</compile_context>

<pallas_src>
import numpy as np
import jax
import jax.numpy as jnp
from jax.experimental import pallas as pl
from jax.experimental.pallas import tpu as pltpu


# ----------------------------------------------------------------------------
# ChildSumTreeGRU kernel: one grid step per BT-sentence tile; serial fori_loop
# over the post-order schedule, batched across the sentence tile.
# ----------------------------------------------------------------------------
def _treegru_kernel(ppos_ref,     # VMEM (S, BT, 1)   int32  parent schedule positions
                    xmat_ref,     # VMEM (S, BT, 3Mp) f32    hoisted x-projections [r|z|h~]
                    w_rzh_ref,    # VMEM (Mp, 2Mp)    bf16   fused r/z hidden weights
                    w_hu_ref,     # VMEM (Mp, Mp)     bf16
                    root_ref,     # out  VMEM (BT, Mp) f32   root hidden states
                    csum_ref):    # scratch VMEM (S+1, BT, Mp) f32 child-sum accumulator
    S = xmat_ref.shape[0]
    BT = xmat_ref.shape[1]
    Mp = w_hu_ref.shape[0]

    # hoisted weight loads (constant across the serial loop)
    w_rzh = w_rzh_ref[...]
    w_hu = w_hu_ref[...]

    # csum_ref[t] accumulates the child-h-sum of the node at schedule position t
    # for every sentence in the tile.  Row S is a dummy sink for the root.
    csum_ref[...] = jnp.zeros_like(csum_ref)

    def step(t, ht):
        ch = csum_ref[t]                                     # (BT, Mp) f32
        xp = xmat_ref[t]                                     # (BT, 3Mp) f32, biases folded
        rz = jax.nn.sigmoid(
            xp[:, :2 * Mp]
            + jnp.dot(ch.astype(jnp.bfloat16), w_rzh,
                      preferred_element_type=jnp.float32))   # fused r|z gates
        r = rz[:, :Mp]
        z = rz[:, Mp:]
        hp = jnp.tanh(
            xp[:, 2 * Mp:]
            + jnp.dot((r * ch).astype(jnp.bfloat16), w_hu,
                      preferred_element_type=jnp.float32))
        ht_new = (1.0 - z) * ch + z * hp                     # (BT, Mp)

        # Scatter this node's hidden state into each sentence's parent slot via a
        # one-hot masked add: lane-dense, unmasked stores; padded sentences whose
        # parent index is the sink (== S) land harmlessly in the sink row.
        par = ppos_ref[t]                                    # (BT, 1) int32
        sel = (jax.lax.broadcasted_iota(jnp.int32, (S + 1, BT, 1), 0)
               == par).astype(jnp.float32)                   # (S+1, BT, 1)
        csum_ref[...] = csum_ref[...] + sel * ht_new[None, :, :]
        return ht_new

    # Serial dependence chain (children before parents, root last).  Partial
    # unroll keeps LLO scheduling visibility while bounding vreg live ranges.
    root = jax.lax.fori_loop(0, S, step, jnp.zeros((BT, Mp), jnp.float32),
                             unroll=max(1, min(S, 8)))
    root_ref[...] = root                                     # one dense (BT, Mp) store


def tree_gru_pallas(parent_pos, emb_sched, p, bt=8):
    """parent_pos: (NB, S) int32; emb_sched: (NB, S, D) embeddings in post-order
    schedule order.  Returns (NB, Mp) root hidden states (lanes >= M are zero)."""
    NB, S, D = emb_sched.shape
    Mp = p["w_hu_pad"].shape[0]

    # Hoisted x-side projection (review item 1): one MXU-shaped batched matmul in
    # XLA instead of re-issuing an (S,D)x(D,3M) matmul inside every grid step.
    xmat = jnp.einsum("bsd,dk->bsk", emb_sched, p["w_x3_pad"]) + p["b_x3_pad"]
    # schedule-major layout so each serial step reads one lane/sublane-dense tile
    xmat = jnp.transpose(xmat, (1, 0, 2))                                   # (S, NB, 3Mp)
    ppos = jnp.transpose(parent_pos.astype(jnp.int32), (1, 0))[:, :, None]  # (S, NB, 1)

    nbp = ((NB + bt - 1) // bt) * bt            # pad batch to a sublane-tile multiple
    if nbp != NB:
        xmat = jnp.pad(xmat, ((0, 0), (0, nbp - NB), (0, 0)))
        ppos = jnp.pad(ppos, ((0, 0), (0, nbp - NB), (0, 0)), constant_values=S)

    grid_spec = pltpu.PrefetchScalarGridSpec(
        num_scalar_prefetch=0,
        grid=(nbp // bt,),
        in_specs=[
            pl.BlockSpec((S, bt, 1), lambda g: (0, g, 0)),        # parent positions
            pl.BlockSpec((S, bt, 3 * Mp), lambda g: (0, g, 0)),   # xmat (schedule-major)
            # TODO(synk): at production D/M pin these constant-index weight inputs to a
            # single buffer (pipeline_mode=pl.Buffered(1)) to halve their VMEM on v7x.
            pl.BlockSpec((Mp, 2 * Mp), lambda g: (0, 0)),         # W_rzh (bf16)
            pl.BlockSpec((Mp, Mp), lambda g: (0, 0)),             # W_hu  (bf16)
        ],
        out_specs=pl.BlockSpec((bt, Mp), lambda g: (g, 0)),
        scratch_shapes=[pltpu.VMEM((S + 1, bt, Mp), jnp.float32)],
    )
    roots = pl.pallas_call(
        _treegru_kernel,
        out_shape=jax.ShapeDtypeStruct((nbp, Mp), jnp.float32),
        grid_spec=grid_spec,
        compiler_params=pltpu.CompilerParams(
            dimension_semantics=("parallel",),
            vmem_limit_bytes=32 * 1024 * 1024),
    )(ppos, xmat, p["w_rzh_pad"], p["w_hu_pad"])
    return roots[:NB]                                             # (NB, Mp)


# ----------------------------------------------------------------------------
# Similarity head: pred = sigmoid( sigmoid([l*r, |l-r|] @ Wh + bh) @ Wp + bp )
# Concat replaced by two split matmuls; final projection on the VPU.
# ----------------------------------------------------------------------------
def _similarity_kernel(l_ref, r_ref, whm_ref, wha_ref, bh_ref, wp_ref, bp_ref, out_ref):
    l = l_ref[...]
    r = r_ref[...]
    # concat([l*r, |l-r|]) @ Wh  ==  (l*r) @ Wh[:M] + |l-r| @ Wh[M:]  (no lane concat)
    hid = jax.nn.sigmoid(
        jnp.dot((l * r).astype(jnp.bfloat16), whm_ref[...],
                preferred_element_type=jnp.float32)
        + jnp.dot(jnp.abs(l - r).astype(jnp.bfloat16), wha_ref[...],
                  preferred_element_type=jnp.float32)
        + bh_ref[...])
    # HID -> 1 projection as VPU multiply + lane reduce (no 1-column MXU matmul)
    logits = jnp.sum(hid * wp_ref[...], axis=-1, keepdims=True) + bp_ref[...]
    out_ref[...] = jax.nn.sigmoid(logits)


def similarity_pallas(lvec, rvec, p):
    B = lvec.shape[0]
    vspec = lambda: pl.BlockSpec(memory_space=pltpu.MemorySpace.VMEM)
    return pl.pallas_call(
        _similarity_kernel,
        out_shape=jax.ShapeDtypeStruct((B, 1), jnp.float32),
        in_specs=[vspec() for _ in range(7)],
        out_specs=vspec(),
    )(lvec, rvec, p["wh_mul"], p["wh_abs"], p["b_wh_pad"], p["wp_pad"], p["b_wp"])


# ----------------------------------------------------------------------------
# Full model forward.  Embedding lookup + schedule reorder are gathers -> plain XLA.
# Left and right trees are fused into ONE tree-GRU kernel call.
# ----------------------------------------------------------------------------
def similarity_tree_gru_forward(p, ltoks, lorder, lppos, rtoks, rorder, rppos):
    lemb = p["emb_table"][ltoks]                                      # (B, S, D)
    remb = p["emb_table"][rtoks]
    lemb_s = jnp.take_along_axis(lemb, lorder[..., None], axis=1)     # schedule order
    remb_s = jnp.take_along_axis(remb, rorder[..., None], axis=1)
    B = ltoks.shape[0]
    emb_all = jnp.concatenate([lemb_s, remb_s], axis=0)               # (2B, S, D)
    ppos_all = jnp.concatenate([lppos, rppos], axis=0)                # (2B, S)
    roots = tree_gru_pallas(ppos_all, emb_all, p)                     # (2B, Mp)
    # TODO(synk): the reference forward passes `lstate` (the always-zero o_states
    # buffer, 3-D) to Similarity, which would not even type-check; the intended
    # semantics (root hidden states of each tree) are used here.
    return similarity_pallas(roots[:B], roots[B:], p)


# ----------------------------------------------------------------------------
# Parameter init (PyTorch shapes) plus fused / lane-padded / transposed kernel layout.
# ----------------------------------------------------------------------------
def _round_up(x, m):
    return ((x + m - 1) // m) * m


def init_params(key, vocab_size, embed_dim, mem_dim, hid_dim, pad_idx=0, lane=128):
    ks = jax.random.split(key, 13)

    def lin(kw, kb, out_f, in_f):
        w = 0.1 * jax.random.normal(kw, (out_f, in_f), jnp.float32)
        b = 0.1 * jax.random.normal(kb, (out_f,), jnp.float32)
        return np.asarray(w), np.asarray(b)

    emb_table = 0.1 * jax.random.normal(ks[0], (vocab_size, embed_dim), jnp.float32)
    emb_table = emb_table.at[pad_idx].set(0.0)                  # padding_idx row = 0

    w_rzx, b_rzx = lin(ks[1], ks[2], 2 * mem_dim, embed_dim)    # nn.Linear(in, 2*mem)
    w_rzh, b_rzh = lin(ks[3], ks[4], 2 * mem_dim, mem_dim)      # nn.Linear(mem, 2*mem)
    w_hx,  b_hx  = lin(ks[5], ks[6], mem_dim, embed_dim)        # nn.Linear(in, mem)
    w_hu,  b_hu  = lin(ks[7], ks[8], mem_dim, mem_dim)          # nn.Linear(mem, mem)
    w_wh,  b_wh  = lin(ks[9], ks[10], hid_dim, 2 * mem_dim)     # nn.Linear(2*mem, hid)
    w_wp,  b_wp  = lin(ks[11], ks[12], 1, hid_dim)              # nn.Linear(hid, 1)

    M, D, H = mem_dim, embed_dim, hid_dim
    Mp = _round_up(M, lane)     # lane-padded mem dim -> tile-aligned gate splits
    Hp = _round_up(H, lane)     # lane-padded hidden dim

    # fused, zero-padded, transposed (row-vector x @ W) kernel layouts
    w_x3 = np.zeros((D, 3 * Mp), np.float32)                    # columns: [ r | z | h~ ]
    w_x3[:, 0:M]               = w_rzx.T[:, :M]
    w_x3[:, Mp:Mp + M]         = w_rzx.T[:, M:]
    w_x3[:, 2 * Mp:2 * Mp + M] = w_hx.T
    b_x3 = np.zeros((3 * Mp,), np.float32)                      # all four biases folded
    b_x3[0:M]               = b_rzx[:M] + b_rzh[:M]
    b_x3[Mp:Mp + M]         = b_rzx[M:] + b_rzh[M:]
    b_x3[2 * Mp:2 * Mp + M] = b_hx + b_hu

    w_rzh_p = np.zeros((Mp, 2 * Mp), np.float32)
    w_rzh_p[:M, 0:M]       = w_rzh.T[:, :M]
    w_rzh_p[:M, Mp:Mp + M] = w_rzh.T[:, M:]
    w_hu_p = np.zeros((Mp, Mp), np.float32)
    w_hu_p[:M, :M] = w_hu.T

    wh_mul = np.zeros((Mp, Hp), np.float32)                     # Wh rows acting on l*r
    wh_mul[:M, :H] = w_wh.T[:M, :]
    wh_abs = np.zeros((Mp, Hp), np.float32)                     # Wh rows acting on |l-r|
    wh_abs[:M, :H] = w_wh.T[M:, :]
    b_wh_p = np.zeros((1, Hp), np.float32)
    b_wh_p[0, :H] = b_wh
    wp_p = np.zeros((1, Hp), np.float32)
    wp_p[0, :H] = w_wp[0]

    return dict(
        emb_table=emb_table,
        # raw PyTorch-layout weights (used only by the numpy reference)
        raw=dict(w_rzx=w_rzx, b_rzx=b_rzx, w_rzh=w_rzh, b_rzh=b_rzh,
                 w_hx=w_hx, b_hx=b_hx, w_hu=w_hu, b_hu=b_hu,
                 w_wh=w_wh, b_wh=b_wh, w_wp=w_wp, b_wp=b_wp),
        # kernel-layout parameters
        w_x3_pad=jnp.asarray(w_x3),                             # (D, 3Mp) f32 (XLA matmul)
        b_x3_pad=jnp.asarray(b_x3),                             # (3Mp,)
        w_rzh_pad=jnp.asarray(w_rzh_p, dtype=jnp.bfloat16),     # (Mp, 2Mp) bf16 (MXU)
        w_hu_pad=jnp.asarray(w_hu_p, dtype=jnp.bfloat16),       # (Mp, Mp)  bf16 (MXU)
        wh_mul=jnp.asarray(wh_mul, dtype=jnp.bfloat16),         # (Mp, Hp)  bf16 (MXU)
        wh_abs=jnp.asarray(wh_abs, dtype=jnp.bfloat16),         # (Mp, Hp)  bf16 (MXU)
        b_wh_pad=jnp.asarray(b_wh_p),                           # (1, Hp)
        wp_pad=jnp.asarray(wp_p),                               # (1, Hp)
        b_wp=jnp.asarray(b_wp.reshape(1, 1)),                   # (1, 1)
    )


def build_tree(parents):
    """parents[i] = parent node index of node i, root has -1.
    Returns (order, parent_pos): post-order node schedule (root last) and, for each
    schedule position t, the schedule position of that node's parent (S for root)."""
    parents = np.asarray(parents)
    S = len(parents)
    children = [[] for _ in range(S)]
    root = None
    for i, pa in enumerate(parents):
        if pa >= 0:
            children[pa].append(i)
        else:
            root = i
    order = []

    def visit(n):
        for c in children[n]:
            visit(c)
        order.append(n)

    visit(root)
    pos_of = {n: t for t, n in enumerate(order)}
    parent_pos = np.full(S, S, np.int32)
    for t, n in enumerate(order):
        pa = int(parents[n])
        if pa >= 0:
            parent_pos[t] = pos_of[pa]
    return np.asarray(order, np.int32), parent_pos


# ----------------------------------------------------------------------------
# Plain-numpy reference (mirrors node_forward / Similarity recursion exactly,
# using the raw PyTorch-layout weights).
# ----------------------------------------------------------------------------
def _sig(x):
    return 1.0 / (1.0 + np.exp(-x))


def ref_forward(params, ltoks, l_parents, rtoks, r_parents):
    raw = {k: np.asarray(v) for k, v in params["raw"].items()}
    emb_table = np.asarray(params["emb_table"])
    M = raw["w_hu"].shape[0]

    def tree_root(toks_b, parents):
        S = len(parents)
        children = [[] for _ in range(S)]
        root = None
        for i, pa in enumerate(parents):
            if pa >= 0:
                children[pa].append(i)
            else:
                root = i
        state = {}

        def visit(n):
            for c in children[n]:
                visit(c)
            x = emb_table[toks_b[n]]
            ch = (np.sum([state[c] for c in children[n]], axis=0)
                  if children[n] else np.zeros(M, np.float32))
            rz = _sig(x @ raw["w_rzx"].T + raw["b_rzx"]
                      + ch @ raw["w_rzh"].T + raw["b_rzh"])
            r, z = rz[:M], rz[M:]
            hp = np.tanh(x @ raw["w_hx"].T + raw["b_hx"]
                         + (r * ch) @ raw["w_hu"].T + raw["b_hu"])
            state[n] = (1.0 - z) * ch + z * hp

        visit(root)
        return state[root]

    lh = np.stack([tree_root(np.asarray(ltoks)[b], l_parents[b])
                   for b in range(len(l_parents))])
    rh = np.stack([tree_root(np.asarray(rtoks)[b], r_parents[b])
                   for b in range(len(r_parents))])
    feat = np.concatenate([lh * rh, np.abs(lh - rh)], axis=1)
    hid = _sig(feat @ raw["w_wh"].T + raw["b_wh"])
    return _sig(hid @ raw["w_wp"].T + raw["b_wp"])


if __name__ == "__main__":
    B, S = 2, 8
    VOCAB, D, M, HID = 50, 32, 32, 32

    key = jax.random.PRNGKey(0)
    kp, kl, kr = jax.random.split(key, 3)
    params = init_params(kp, VOCAB, D, M, HID)

    ltoks = jax.random.randint(kl, (B, S), 1, VOCAB, dtype=jnp.int32)
    rtoks = jax.random.randint(kr, (B, S), 1, VOCAB, dtype=jnp.int32)

    # deterministic small trees (per batch element): parent indices, root = -1
    l_parents = [[1, 2, 3, 4, 5, 6, 7, -1],      # chain, root 7
                 [7, 7, 7, 7, 7, 7, 7, -1]]      # star,  root 7
    r_parents = [[1, 3, 3, 7, 5, 7, 7, -1],      # small branching tree, root 7
                 [-1, 0, 1, 2, 3, 4, 5, 6]]      # reversed chain, root 0

    lorders, lppos_l = zip(*(build_tree(p) for p in l_parents))
    rorders, rppos_l = zip(*(build_tree(p) for p in r_parents))
    lorder = jnp.asarray(np.stack(lorders))
    lppos = jnp.asarray(np.stack(lppos_l), dtype=jnp.int32)
    rorder = jnp.asarray(np.stack(rorders))
    rppos = jnp.asarray(np.stack(rppos_l), dtype=jnp.int32)

    pred = similarity_tree_gru_forward(params, ltoks, lorder, lppos,
                                       rtoks, rorder, rppos)
    pred = jax.block_until_ready(pred)

    ref = ref_forward(params, np.asarray(ltoks), l_parents,
                      np.asarray(rtoks), r_parents)
    assert pred.shape == (B, 1)
    assert np.allclose(np.asarray(pred), ref, atol=5e-3, rtol=5e-3), (pred, ref)

    print("KERNEL_OK")
</pallas_src>

<mosaic_0001>
module attributes {stable_mosaic.version = 11 : i64} {
  func.func @_treegru_kernel(%arg0: i32, %arg1: memref<8x8x1xi32, #tpu.memory_space<vmem>>, %arg2: memref<8x8x384xf32, #tpu.memory_space<vmem>>, %arg3: memref<128x256xbf16, #tpu.memory_space<vmem>>, %arg4: memref<128x128xbf16, #tpu.memory_space<vmem>>, %arg5: memref<8x128xf32, #tpu.memory_space<vmem>>, %arg6: memref<9x8x128xf32, #tpu.memory_space<vmem>>) attributes {dimension_semantics = [#tpu.dimension_semantics<parallel>], iteration_bounds = array<i64: 1>, scalar_prefetch = 0 : i64, scratch_operands = 1 : i64, tpu.core_type = #tpu.core_type<tc>, window_params = [{transform_indices = @transform_0, window_bounds = array<i64: 8, 8, 1>}, {transform_indices = @transform_1, window_bounds = array<i64: 8, 8, 384>}, {pipeline_mode = #tpu.pipeline_mode<synchronous>, transform_indices = @transform_2, window_bounds = array<i64: 128, 256>}, {pipeline_mode = #tpu.pipeline_mode<synchronous>, transform_indices = @transform_3, window_bounds = array<i64: 128, 128>}, {transform_indices = @transform_4, window_bounds = array<i64: 8, 128>}]} {
    %c0 = arith.constant 0 : index
    %c0_0 = arith.constant 0 : index
    %0 = vector.load %arg3[%c0, %c0_0] : memref<128x256xbf16, #tpu.memory_space<vmem>>, vector<128x256xbf16>
    %c0_1 = arith.constant 0 : index
    %c0_2 = arith.constant 0 : index
    %1 = vector.load %arg4[%c0_1, %c0_2] : memref<128x128xbf16, #tpu.memory_space<vmem>>, vector<128x128xbf16>
    %cst = arith.constant 0.000000e+00 : f32
    %2 = vector.broadcast %cst : f32 to vector<9x8x128xf32>
    %c0_3 = arith.constant 0 : index
    %c0_4 = arith.constant 0 : index
    %c0_5 = arith.constant 0 : index
    %3 = vector.load %arg6[%c0_3, %c0_4, %c0_5] : memref<9x8x128xf32, #tpu.memory_space<vmem>>, vector<9x8x128xf32>
    tpu.vector_store %arg6[%c0_3, %c0_4, %c0_5], %2 {strides = array<i32>} : memref<9x8x128xf32, #tpu.memory_space<vmem>>, vector<9x8x128xf32>,
    %cst_6 = arith.constant 0.000000e+00 : f32
    %4 = vector.broadcast %cst_6 : f32 to vector<8x128xf32>
    %c0_i32 = arith.constant 0 : i32
    %5 = arith.index_cast %c0_i32 : i32 to index
    %c0_7 = arith.constant 0 : index
    %c0_8 = arith.constant 0 : index
    %6 = vector.load %arg6[%5, %c0_7, %c0_8] : memref<9x8x128xf32, #tpu.memory_space<vmem>>, vector<1x8x128xf32>
    %7 = vector.shape_cast %6 : vector<1x8x128xf32> to vector<8x128xf32>
    %8 = arith.index_cast %c0_i32 : i32 to index
    %c0_9 = arith.constant 0 : index
    %c0_10 = arith.constant 0 : index
    %9 = vector.load %arg2[%8, %c0_9, %c0_10] : memref<8x8x384xf32, #tpu.memory_space<vmem>>, vector<1x8x384xf32>
    %10 = vector.shape_cast %9 : vector<1x8x384xf32> to vector<8x384xf32>
    %11 = vector.extract_strided_slice %10 {offsets = [0, 0], sizes = [8, 256], strides = [1, 1]} : vector<8x384xf32> to vector<8x256xf32>
    %12 = arith.truncf %7 : vector<8x128xf32> to vector<8x128xbf16>
    %cst_11 = arith.constant dense<0.000000e+00> : vector<8x256xf32>
    %13 = tpu.matmul %12, %0, %cst_11 {dimension_numbers = #tpu.dot_dimension_numbers<[1], [0], [0], [1], [0, 0, 1, 1], [], []>} : vector<8x128xbf16>, vector<128x256xbf16>, vector<8x256xf32> -> vector<8x256xf32>
    %14 = arith.addf %11, %13 : vector<8x256xf32>
    %15 = arith.negf %14 : vector<8x256xf32>
    %16 = math.exp %15 : vector<8x256xf32>
    %cst_12 = arith.constant 1.000000e+00 : f32
    %17 = vector.broadcast %cst_12 : f32 to vector<8x256xf32>
    %18 = arith.addf %17, %16 : vector<8x256xf32>
    %19 = arith.divf %17, %18 : vector<8x256xf32>
    %20 = vector.extract_strided_slice %19 {offsets = [0, 0], sizes = [8, 128], strides = [1, 1]} : vector<8x256xf32> to vector<8x128xf32>
    %21 = vector.extract_strided_slice %19 {offsets = [0, 128], sizes = [8, 128], strides = [1, 1]} : vector<8x256xf32> to vector<8x128xf32>
    %22 = vector.extract_strided_slice %10 {offsets = [0, 256], sizes = [8, 128], strides = [1, 1]} : vector<8x384xf32> to vector<8x128xf32>
    %23 = arith.mulf %20, %7 : vector<8x128xf32>
    %24 = arith.truncf %23 : vector<8x128xf32> to vector<8x128xbf16>
    %cst_13 = arith.constant dense<0.000000e+00> : vector<8x128xf32>
    %25 = tpu.matmul %24, %1, %cst_13 {dimension_numbers = #tpu.dot_dimension_numbers<[1], [0], [0], [1], [0, 0, 1, 1], [], []>} : vector<8x128xbf16>, vector<128x128xbf16>, vector<8x128xf32> -> vector<8x128xf32>
    %26 = arith.addf %22, %25 : vector<8x128xf32>
    %27 = math.tanh %26 : vector<8x128xf32>
    %cst_14 = arith.constant 1.000000e+00 : f32
    %28 = vector.broadcast %cst_14 : f32 to vector<8x128xf32>
    %29 = arith.subf %28, %21 : vector<8x128xf32>
    %30 = arith.mulf %29, %7 : vector<8x128xf32>
    %31 = arith.mulf %21, %27 : vector<8x128xf32>
    %32 = arith.addf %30, %31 : vector<8x128xf32>
    %33 = arith.index_cast %c0_i32 : i32 to index
    %c0_15 = arith.constant 0 : index
    %c0_16 = arith.constant 0 : index
    %34 = vector.load %arg1[%33, %c0_15, %c0_16] : memref<8x8x1xi32, #tpu.memory_space<vmem>>, vector<1x8x1xi32>
    %35 = vector.shape_cast %34 : vector<1x8x1xi32> to vector<8x1xi32>
    %36 = tpu.iota {dimensions = array<i32: 0>} : vector<9x8x1xi32>
    %37 = vector.shape_cast %35 : vector<8x1xi32> to vector<1x8x1xi32>
    %38 = vector.broadcast %37 : vector<1x8x1xi32> to vector<9x8x1xi32>
    %39 = arith.cmpi eq, %36, %38 : vector<9x8x1xi32>
    %40 = arith.extui %39 : vector<9x8x1xi1> to vector<9x8x1xi32>
    %41 = arith.sitofp %40 : vector<9x8x1xi32> to vector<9x8x1xf32>
    %c0_17 = arith.constant 0 : index
    %c0_18 = arith.constant 0 : index
    %c0_19 = arith.constant 0 : index
    %42 = vector.load %arg6[%c0_17, %c0_18, %c0_19] : memref<9x8x128xf32, #tpu.memory_space<vmem>>, vector<9x8x128xf32>
    %43 = vector.shape_cast %32 : vector<8x128xf32> to vector<1x8x128xf32>
    %44 = vector.broadcast %41 : vector<9x8x1xf32> to vector<9x8x128xf32>
    %45 = vector.broadcast %43 : vector<1x8x128xf32> to vector<9x8x128xf32>
    %46 = arith.mulf %44, %45 : vector<9x8x128xf32>
    %47 = arith.addf %42, %46 : vector<9x8x128xf32>
    %c0_20 = arith.constant 0 : index
    %c0_21 = arith.constant 0 : index
    %c0_22 = arith.constant 0 : index
    %48 = vector.load %arg6[%c0_20, %c0_21, %c0_22] : memref<9x8x128xf32, #tpu.memory_space<vmem>>, vector<9x8x128xf32>
    tpu.vector_store %arg6[%c0_20, %c0_21, %c0_22], %47 {strides = array<i32>} : memref<9x8x128xf32, #tpu.memory_space<vmem>>, vector<9x8x128xf32>,
    %c1_i32 = arith.constant 1 : i32
    %49 = arith.index_cast %c1_i32 : i32 to index
    %c0_23 = arith.constant 0 : index
    %c0_24 = arith.constant 0 : index
    %50 = vector.load %arg6[%49, %c0_23, %c0_24] : memref<9x8x128xf32, #tpu.memory_space<vmem>>, vector<1x8x128xf32>
    %51 = vector.shape_cast %50 : vector<1x8x128xf32> to vector<8x128xf32>
    %52 = arith.index_cast %c1_i32 : i32 to index
    %c0_25 = arith.constant 0 : index
    %c0_26 = arith.constant 0 : index
    %53 = vector.load %arg2[%52, %c0_25, %c0_26] : memref<8x8x384xf32, #tpu.memory_space<vmem>>, vector<1x8x384xf32>
    %54 = vector.shape_cast %53 : vector<1x8x384xf32> to vector<8x384xf32>
    %55 = vector.extract_strided_slice %54 {offsets = [0, 0], sizes = [8, 256], strides = [1, 1]} : vector<8x384xf32> to vector<8x256xf32>
    %56 = arith.truncf %51 : vector<8x128xf32> to vector<8x128xbf16>
    %cst_27 = arith.constant dense<0.000000e+00> : vector<8x256xf32>
    %57 = tpu.matmul %56, %0, %cst_27 {dimension_numbers = #tpu.dot_dimension_numbers<[1], [0], [0], [1], [0, 0, 1, 1], [], []>} : vector<8x128xbf16>, vector<128x256xbf16>, vector<8x256xf32> -> vector<8x256xf32>
    %58 = arith.addf %55, %57 : vector<8x256xf32>
    %59 = arith.negf %58 : vector<8x256xf32>
    %60 = math.exp %59 : vector<8x256xf32>
    %cst_28 = arith.constant 1.000000e+00 : f32
    %61 = vector.broadcast %cst_28 : f32 to vector<8x256xf32>
    %62 = arith.addf %61, %60 : vector<8x256xf32>
    %63 = arith.divf %61, %62 : vector<8x256xf32>
    %64 = vector.extract_strided_slice %63 {offsets = [0, 0], sizes = [8, 128], strides = [1, 1]} : vector<8x256xf32> to vector<8x128xf32>
    %65 = vector.extract_strided_slice %63 {offsets = [0, 128], sizes = [8, 128], strides = [1, 1]} : vector<8x256xf32> to vector<8x128xf32>
    %66 = vector.extract_strided_slice %54 {offsets = [0, 256], sizes = [8, 128], strides = [1, 1]} : vector<8x384xf32> to vector<8x128xf32>
    %67 = arith.mulf %64, %51 : vector<8x128xf32>
    %68 = arith.truncf %67 : vector<8x128xf32> to vector<8x128xbf16>
    %cst_29 = arith.constant dense<0.000000e+00> : vector<8x128xf32>
    %69 = tpu.matmul %68, %1, %cst_29 {dimension_numbers = #tpu.dot_dimension_numbers<[1], [0], [0], [1], [0, 0, 1, 1], [], []>} : vector<8x128xbf16>, vector<128x128xbf16>, vector<8x128xf32> -> vector<8x128xf32>
    %70 = arith.addf %66, %69 : vector<8x128xf32>
    %71 = math.tanh %70 : vector<8x128xf32>
    %cst_30 = arith.constant 1.000000e+00 : f32
    %72 = vector.broadcast %cst_30 : f32 to vector<8x128xf32>
    %73 = arith.subf %72, %65 : vector<8x128xf32>
    %74 = arith.mulf %73, %51 : vector<8x128xf32>
    %75 = arith.mulf %65, %71 : vector<8x128xf32>
    %76 = arith.addf %74, %75 : vector<8x128xf32>
    %77 = arith.index_cast %c1_i32 : i32 to index
    %c0_31 = arith.constant 0 : index
    %c0_32 = arith.constant 0 : index
    %78 = vector.load %arg1[%77, %c0_31, %c0_32] : memref<8x8x1xi32, #tpu.memory_space<vmem>>, vector<1x8x1xi32>
    %79 = vector.shape_cast %78 : vector<1x8x1xi32> to vector<8x1xi32>
    %80 = tpu.iota {dimensions = array<i32: 0>} : vector<9x8x1xi32>
    %81 = vector.shape_cast %79 : vector<8x1xi32> to vector<1x8x1xi32>
    %82 = vector.broadcast %81 : vector<1x8x1xi32> to vector<9x8x1xi32>
    %83 = arith.cmpi eq, %80, %82 : vector<9x8x1xi32>
    %84 = arith.extui %83 : vector<9x8x1xi1> to vector<9x8x1xi32>
    %85 = arith.sitofp %84 : vector<9x8x1xi32> to vector<9x8x1xf32>
    %c0_33 = arith.constant 0 : index
    %c0_34 = arith.constant 0 : index
    %c0_35 = arith.constant 0 : index
    %86 = vector.load %arg6[%c0_33, %c0_34, %c0_35] : memref<9x8x128xf32, #tpu.memory_space<vmem>>, vector<9x8x128xf32>
    %87 = vector.shape_cast %76 : vector<8x128xf32> to vector<1x8x128xf32>
    %88 = vector.broadcast %85 : vector<9x8x1xf32> to vector<9x8x128xf32>
    %89 = vector.broadcast %87 : vector<1x8x128xf32> to vector<9x8x128xf32>
    %90 = arith.mulf %88, %89 : vector<9x8x128xf32>
    %91 = arith.addf %86, %90 : vector<9x8x128xf32>
    %c0_36 = arith.constant 0 : index
    %c0_37 = arith.constant 0 : index
    %c0_38 = arith.constant 0 : index
    %92 = vector.load %arg6[%c0_36, %c0_37, %c0_38] : memref<9x8x128xf32, #tpu.memory_space<vmem>>, vector<9x8x128xf32>
    tpu.vector_store %arg6[%c0_36, %c0_37, %c0_38], %91 {strides = array<i32>} : memref<9x8x128xf32, #tpu.memory_space<vmem>>, vector<9x8x128xf32>,
    %c2_i32 = arith.constant 2 : i32
    %93 = arith.index_cast %c2_i32 : i32 to index
    %c0_39 = arith.constant 0 : index
    %c0_40 = arith.constant 0 : index
    %94 = vector.load %arg6[%93, %c0_39, %c0_40] : memref<9x8x128xf32, #tpu.memory_space<vmem>>, vector<1x8x128xf32>
    %95 = vector.shape_cast %94 : vector<1x8x128xf32> to vector<8x128xf32>
    %96 = arith.index_cast %c2_i32 : i32 to index
    %c0_41 = arith.constant 0 : index
    %c0_42 = arith.constant 0 : index
    %97 = vector.load %arg2[%96, %c0_41, %c0_42] : memref<8x8x384xf32, #tpu.memory_space<vmem>>, vector<1x8x384xf32>
    %98 = vector.shape_cast %97 : vector<1x8x384xf32> to vector<8x384xf32>
    %99 = vector.extract_strided_slice %98 {offsets = [0, 0], sizes = [8, 256], strides = [1, 1]} : vector<8x384xf32> to vector<8x256xf32>
    %100 = arith.truncf %95 : vector<8x128xf32> to vector<8x128xbf16>
    %cst_43 = arith.constant dense<0.000000e+00> : vector<8x256xf32>
    %101 = tpu.matmul %100, %0, %cst_43 {dimension_numbers = #tpu.dot_dimension_numbers<[1], [0], [0], [1], [0, 0, 1, 1], [], []>} : vector<8x128xbf16>, vector<128x256xbf16>, vector<8x256xf32> -> vector<8x256xf32>
    %102 = arith.addf %99, %101 : vector<8x256xf32>
    %103 = arith.negf %102 : vector<8x256xf32>
    %104 = math.exp %103 : vector<8x256xf32>
    %cst_44 = arith.constant 1.000000e+00 : f32
    %105 = vector.broadcast %cst_44 : f32 to vector<8x256xf32>
    %106 = arith.addf %105, %104 : vector<8x256xf32>
    %107 = arith.divf %105, %106 : vector<8x256xf32>
    %108 = vector.extract_strided_slice %107 {offsets = [0, 0], sizes = [8, 128], strides = [1, 1]} : vector<8x256xf32> to vector<8x128xf32>
    %109 = vector.extract_strided_slice %107 {offsets = [0, 128], sizes = [8, 128], strides = [1, 1]} : vector<8x256xf32> to vector<8x128xf32>
    %110 = vector.extract_strided_slice %98 {offsets = [0, 256], sizes = [8, 128], strides = [1, 1]} : vector<8x384xf32> to vector<8x128xf32>
    %111 = arith.mulf %108, %95 : vector<8x128xf32>
    %112 = arith.truncf %111 : vector<8x128xf32> to vector<8x128xbf16>
    %cst_45 = arith.constant dense<0.000000e+00> : vector<8x128xf32>
    %113 = tpu.matmul %112, %1, %cst_45 {dimension_numbers = #tpu.dot_dimension_numbers<[1], [0], [0], [1], [0, 0, 1, 1], [], []>} : vector<8x128xbf16>, vector<128x128xbf16>, vector<8x128xf32> -> vector<8x128xf32>
    %114 = arith.addf %110, %113 : vector<8x128xf32>
    %115 = math.tanh %114 : vector<8x128xf32>
    %cst_46 = arith.constant 1.000000e+00 : f32
    %116 = vector.broadcast %cst_46 : f32 to vector<8x128xf32>
    %117 = arith.subf %116, %109 : vector<8x128xf32>
    %118 = arith.mulf %117, %95 : vector<8x128xf32>
    %119 = arith.mulf %109, %115 : vector<8x128xf32>
    %120 = arith.addf %118, %119 : vector<8x128xf32>
    %121 = arith.index_cast %c2_i32 : i32 to index
    %c0_47 = arith.constant 0 : index
    %c0_48 = arith.constant 0 : index
    %122 = vector.load %arg1[%121, %c0_47, %c0_48] : memref<8x8x1xi32, #tpu.memory_space<vmem>>, vector<1x8x1xi32>
    %123 = vector.shape_cast %122 : vector<1x8x1xi32> to vector<8x1xi32>
    %124 = tpu.iota {dimensions = array<i32: 0>} : vector<9x8x1xi32>
    %125 = vector.shape_cast %123 : vector<8x1xi32> to vector<1x8x1xi32>
    %126 = vector.broadcast %125 : vector<1x8x1xi32> to vector<9x8x1xi32>
    %127 = arith.cmpi eq, %124, %126 : vector<9x8x1xi32>
    %128 = arith.extui %127 : vector<9x8x1xi1> to vector<9x8x1xi32>
    %129 = arith.sitofp %128 : vector<9x8x1xi32> to vector<9x8x1xf32>
    %c0_49 = arith.constant 0 : index
    %c0_50 = arith.constant 0 : index
    %c0_51 = arith.constant 0 : index
    %130 = vector.load %arg6[%c0_49, %c0_50, %c0_51] : memref<9x8x128xf32, #tpu.memory_space<vmem>>, vector<9x8x128xf32>
    %131 = vector.shape_cast %120 : vector<8x128xf32> to vector<1x8x128xf32>
    %132 = vector.broadcast %129 : vector<9x8x1xf32> to vector<9x8x128xf32>
    %133 = vector.broadcast %131 : vector<1x8x128xf32> to vector<9x8x128xf32>
    %134 = arith.mulf %132, %133 : vector<9x8x128xf32>
    %135 = arith.addf %130, %134 : vector<9x8x128xf32>
    %c0_52 = arith.constant 0 : index
    %c0_53 = arith.constant 0 : index
    %c0_54 = arith.constant 0 : index
    %136 = vector.load %arg6[%c0_52, %c0_53, %c0_54] : memref<9x8x128xf32, #tpu.memory_space<vmem>>, vector<9x8x128xf32>
    tpu.vector_store %arg6[%c0_52, %c0_53, %c0_54], %135 {strides = array<i32>} : memref<9x8x128xf32, #tpu.memory_space<vmem>>, vector<9x8x128xf32>,
    %c3_i32 = arith.constant 3 : i32
    %137 = arith.index_cast %c3_i32 : i32 to index
    %c0_55 = arith.constant 0 : index
    %c0_56 = arith.constant 0 : index
    %138 = vector.load %arg6[%137, %c0_55, %c0_56] : memref<9x8x128xf32, #tpu.memory_space<vmem>>, vector<1x8x128xf32>
    %139 = vector.shape_cast %138 : vector<1x8x128xf32> to vector<8x128xf32>
    %140 = arith.index_cast %c3_i32 : i32 to index
    %c0_57 = arith.constant 0 : index
    %c0_58 = arith.constant 0 : index
    %141 = vector.load %arg2[%140, %c0_57, %c0_58] : memref<8x8x384xf32, #tpu.memory_space<vmem>>, vector<1x8x384xf32>
    %142 = vector.shape_cast %141 : vector<1x8x384xf32> to vector<8x384xf32>
    %143 = vector.extract_strided_slice %142 {offsets = [0, 0], sizes = [8, 256], strides = [1, 1]} : vector<8x384xf32> to vector<8x256xf32>
    %144 = arith.truncf %139 : vector<8x128xf32> to vector<8x128xbf16>
    %cst_59 = arith.constant dense<0.000000e+00> : vector<8x256xf32>
    %145 = tpu.matmul %144, %0, %cst_59 {dimension_numbers = #tpu.dot_dimension_numbers<[1], [0], [0], [1], [0, 0, 1, 1], [], []>} : vector<8x128xbf16>, vector<128x256xbf16>, vector<8x256xf32> -> vector<8x256xf32>
    %146 = arith.addf %143, %145 : vector<8x256xf32>
    %147 = arith.negf %146 : vector<8x256xf32>
    %148 = math.exp %147 : vector<8x256xf32>
    %cst_60 = arith.constant 1.000000e+00 : f32
    %149 = vector.broadcast %cst_60 : f32 to vector<8x256xf32>
    %150 = arith.addf %149, %148 : vector<8x256xf32>
    %151 = arith.divf %149, %150 : vector<8x256xf32>
    %152 = vector.extract_strided_slice %151 {offsets = [0, 0], sizes = [8, 128], strides = [1, 1]} : vector<8x256xf32> to vector<8x128xf32>
    %153 = vector.extract_strided_slice %151 {offsets = [0, 128], sizes = [8, 128], strides = [1, 1]} : vector<8x256xf32> to vector<8x128xf32>
    %154 = vector.extract_strided_slice %142 {offsets = [0, 256], sizes = [8, 128], strides = [1, 1]} : vector<8x384xf32> to vector<8x128xf32>
    %155 = arith.mulf %152, %139 : vector<8x128xf32>
    %156 = arith.truncf %155 : vector<8x128xf32> to vector<8x128xbf16>
    %cst_61 = arith.constant dense<0.000000e+00> : vector<8x128xf32>
    %157 = tpu.matmul %156, %1, %cst_61 {dimension_numbers = #tpu.dot_dimension_numbers<[1], [0], [0], [1], [0, 0, 1, 1], [], []>} : vector<8x128xbf16>, vector<128x128xbf16>, vector<8x128xf32> -> vector<8x128xf32>
    %158 = arith.addf %154, %157 : vector<8x128xf32>
    %159 = math.tanh %158 : vector<8x128xf32>
    %cst_62 = arith.constant 1.000000e+00 : f32
    %160 = vector.broadcast %cst_62 : f32 to vector<8x128xf32>
    %161 = arith.subf %160, %153 : vector<8x128xf32>
    %162 = arith.mulf %161, %139 : vector<8x128xf32>
    %163 = arith.mulf %153, %159 : vector<8x128xf32>
    %164 = arith.addf %162, %163 : vector<8x128xf32>
    %165 = arith.index_cast %c3_i32 : i32 to index
    %c0_63 = arith.constant 0 : index
    %c0_64 = arith.constant 0 : index
    %166 = vector.load %arg1[%165, %c0_63, %c0_64] : memref<8x8x1xi32, #tpu.memory_space<vmem>>, vector<1x8x1xi32>
    %167 = vector.shape_cast %166 : vector<1x8x1xi32> to vector<8x1xi32>
    %168 = tpu.iota {dimensions = array<i32: 0>} : vector<9x8x1xi32>
    %169 = vector.shape_cast %167 : vector<8x1xi32> to vector<1x8x1xi32>
    %170 = vector.broadcast %169 : vector<1x8x1xi32> to vector<9x8x1xi32>
    %171 = arith.cmpi eq, %168, %170 : vector<9x8x1xi32>
    %172 = arith.extui %171 : vector<9x8x1xi1> to vector<9x8x1xi32>
    %173 = arith.sitofp %172 : vector<9x8x1xi32> to vector<9x8x1xf32>
    %c0_65 = arith.constant 0 : index
    %c0_66 = arith.constant 0 : index
    %c0_67 = arith.constant 0 : index
    %174 = vector.load %arg6[%c0_65, %c0_66, %c0_67] : memref<9x8x128xf32, #tpu.memory_space<vmem>>, vector<9x8x128xf32>
    %175 = vector.shape_cast %164 : vector<8x128xf32> to vector<1x8x128xf32>
    %176 = vector.broadcast %173 : vector<9x8x1xf32> to vector<9x8x128xf32>
    %177 = vector.broadcast %175 : vector<1x8x128xf32> to vector<9x8x128xf32>
    %178 = arith.mulf %176, %177 : vector<9x8x128xf32>
    %179 = arith.addf %174, %178 : vector<9x8x128xf32>
    %c0_68 = arith.constant 0 : index
    %c0_69 = arith.constant 0 : index
    %c0_70 = arith.constant 0 : index
    %180 = vector.load %arg6[%c0_68, %c0_69, %c0_70] : memref<9x8x128xf32, #tpu.memory_space<vmem>>, vector<9x8x128xf32>
    tpu.vector_store %arg6[%c0_68, %c0_69, %c0_70], %179 {strides = array<i32>} : memref<9x8x128xf32, #tpu.memory_space<vmem>>, vector<9x8x128xf32>,
    %c4_i32 = arith.constant 4 : i32
    %181 = arith.index_cast %c4_i32 : i32 to index
    %c0_71 = arith.constant 0 : index
    %c0_72 = arith.constant 0 : index
    %182 = vector.load %arg6[%181, %c0_71, %c0_72] : memref<9x8x128xf32, #tpu.memory_space<vmem>>, vector<1x8x128xf32>
    %183 = vector.shape_cast %182 : vector<1x8x128xf32> to vector<8x128xf32>
    %184 = arith.index_cast %c4_i32 : i32 to index
    %c0_73 = arith.constant 0 : index
    %c0_74 = arith.constant 0 : index
    %185 = vector.load %arg2[%184, %c0_73, %c0_74] : memref<8x8x384xf32, #tpu.memory_space<vmem>>, vector<1x8x384xf32>
    %186 = vector.shape_cast %185 : vector<1x8x384xf32> to vector<8x384xf32>
    %187 = vector.extract_strided_slice %186 {offsets = [0, 0], sizes = [8, 256], strides = [1, 1]} : vector<8x384xf32> to vector<8x256xf32>
    %188 = arith.truncf %183 : vector<8x128xf32> to vector<8x128xbf16>
    %cst_75 = arith.constant dense<0.000000e+00> : vector<8x256xf32>
    %189 = tpu.matmul %188, %0, %cst_75 {dimension_numbers = #tpu.dot_dimension_numbers<[1], [0], [0], [1], [0, 0, 1, 1], [], []>} : vector<8x128xbf16>, vector<128x256xbf16>, vector<8x256xf32> -> vector<8x256xf32>
    %190 = arith.addf %187, %189 : vector<8x256xf32>
    %191 = arith.negf %190 : vector<8x256xf32>
    %192 = math.exp %191 : vector<8x256xf32>
    %cst_76 = arith.constant 1.000000e+00 : f32
    %193 = vector.broadcast %cst_76 : f32 to vector<8x256xf32>
    %194 = arith.addf %193, %192 : vector<8x256xf32>
    %195 = arith.divf %193, %194 : vector<8x256xf32>
    %196 = vector.extract_strided_slice %195 {offsets = [0, 0], sizes = [8, 128], strides = [1, 1]} : vector<8x256xf32> to vector<8x128xf32>
    %197 = vector.extract_strided_slice %195 {offsets = [0, 128], sizes = [8, 128], strides = [1, 1]} : vector<8x256xf32> to vector<8x128xf32>
    %198 = vector.extract_strided_slice %186 {offsets = [0, 256], sizes = [8, 128], strides = [1, 1]} : vector<8x384xf32> to vector<8x128xf32>
    %199 = arith.mulf %196, %183 : vector<8x128xf32>
    %200 = arith.truncf %199 : vector<8x128xf32> to vector<8x128xbf16>
    %cst_77 = arith.constant dense<0.000000e+00> : vector<8x128xf32>
    %201 = tpu.matmul %200, %1, %cst_77 {dimension_numbers = #tpu.dot_dimension_numbers<[1], [0], [0], [1], [0, 0, 1, 1], [], []>} : vector<8x128xbf16>, vector<128x128xbf16>, vector<8x128xf32> -> vector<8x128xf32>
    %202 = arith.addf %198, %201 : vector<8x128xf32>
    %203 = math.tanh %202 : vector<8x128xf32>
    %cst_78 = arith.constant 1.000000e+00 : f32
    %204 = vector.broadcast %cst_78 : f32 to vector<8x128xf32>
    %205 = arith.subf %204, %197 : vector<8x128xf32>
    %206 = arith.mulf %205, %183 : vector<8x128xf32>
    %207 = arith.mulf %197, %203 : vector<8x128xf32>
    %208 = arith.addf %206, %207 : vector<8x128xf32>
    %209 = arith.index_cast %c4_i32 : i32 to index
    %c0_79 = arith.constant 0 : index
    %c0_80 = arith.constant 0 : index
    %210 = vector.load %arg1[%209, %c0_79, %c0_80] : memref<8x8x1xi32, #tpu.memory_space<vmem>>, vector<1x8x1xi32>
    %211 = vector.shape_cast %210 : vector<1x8x1xi32> to vector<8x1xi32>
    %212 = tpu.iota {dimensions = array<i32: 0>} : vector<9x8x1xi32>
    %213 = vector.shape_cast %211 : vector<8x1xi32> to vector<1x8x1xi32>
    %214 = vector.broadcast %213 : vector<1x8x1xi32> to vector<9x8x1xi32>
    %215 = arith.cmpi eq, %212, %214 : vector<9x8x1xi32>
    %216 = arith.extui %215 : vector<9x8x1xi1> to vector<9x8x1xi32>
    %217 = arith.sitofp %216 : vector<9x8x1xi32> to vector<9x8x1xf32>
    %c0_81 = arith.constant 0 : index
    %c0_82 = arith.constant 0 : index
    %c0_83 = arith.constant 0 : index
    %218 = vector.load %arg6[%c0_81, %c0_82, %c0_83] : memref<9x8x128xf32, #tpu.memory_space<vmem>>, vector<9x8x128xf32>
    %219 = vector.shape_cast %208 : vector<8x128xf32> to vector<1x8x128xf32>
    %220 = vector.broadcast %217 : vector<9x8x1xf32> to vector<9x8x128xf32>
    %221 = vector.broadcast %219 : vector<1x8x128xf32> to vector<9x8x128xf32>
    %222 = arith.mulf %220, %221 : vector<9x8x128xf32>
    %223 = arith.addf %218, %222 : vector<9x8x128xf32>
    %c0_84 = arith.constant 0 : index
    %c0_85 = arith.constant 0 : index
    %c0_86 = arith.constant 0 : index
    %224 = vector.load %arg6[%c0_84, %c0_85, %c0_86] : memref<9x8x128xf32, #tpu.memory_space<vmem>>, vector<9x8x128xf32>
    tpu.vector_store %arg6[%c0_84, %c0_85, %c0_86], %223 {strides = array<i32>} : memref<9x8x128xf32, #tpu.memory_space<vmem>>, vector<9x8x128xf32>,
    %c5_i32 = arith.constant 5 : i32
    %225 = arith.index_cast %c5_i32 : i32 to index
    %c0_87 = arith.constant 0 : index
    %c0_88 = arith.constant 0 : index
    %226 = vector.load %arg6[%225, %c0_87, %c0_88] : memref<9x8x128xf32, #tpu.memory_space<vmem>>, vector<1x8x128xf32>
    %227 = vector.shape_cast %226 : vector<1x8x128xf32> to vector<8x128xf32>
    %228 = arith.index_cast %c5_i32 : i32 to index
    %c0_89 = arith.constant 0 : index
    %c0_90 = arith.constant 0 : index
    %229 = vector.load %arg2[%228, %c0_89, %c0_90] : memref<8x8x384xf32, #tpu.memory_space<vmem>>, vector<1x8x384xf32>
    %230 = vector.shape_cast %229 : vector<1x8x384xf32> to vector<8x384xf32>
    %231 = vector.extract_strided_slice %230 {offsets = [0, 0], sizes = [8, 256], strides = [1, 1]} : vector<8x384xf32> to vector<8x256xf32>
    %232 = arith.truncf %227 : vector<8x128xf32> to vector<8x128xbf16>
    %cst_91 = arith.constant dense<0.000000e+00> : vector<8x256xf32>
    %233 = tpu.matmul %232, %0, %cst_91 {dimension_numbers = #tpu.dot_dimension_numbers<[1], [0], [0], [1], [0, 0, 1, 1], [], []>} : vector<8x128xbf16>, vector<128x256xbf16>, vector<8x256xf32> -> vector<8x256xf32>
    %234 = arith.addf %231, %233 : vector<8x256xf32>
    %235 = arith.negf %234 : vector<8x256xf32>
    %236 = math.exp %235 : vector<8x256xf32>
    %cst_92 = arith.constant 1.000000e+00 : f32
    %237 = vector.broadcast %cst_92 : f32 to vector<8x256xf32>
    %238 = arith.addf %237, %236 : vector<8x256xf32>
    %239 = arith.divf %237, %238 : vector<8x256xf32>
    %240 = vector.extract_strided_slice %239 {offsets = [0, 0], sizes = [8, 128], strides = [1, 1]} : vector<8x256xf32> to vector<8x128xf32>
    %241 = vector.extract_strided_slice %239 {offsets = [0, 128], sizes = [8, 128], strides = [1, 1]} : vector<8x256xf32> to vector<8x128xf32>
    %242 = vector.extract_strided_slice %230 {offsets = [0, 256], sizes = [8, 128], strides = [1, 1]} : vector<8x384xf32> to vector<8x128xf32>
    %243 = arith.mulf %240, %227 : vector<8x128xf32>
    %244 = arith.truncf %243 : vector<8x128xf32> to vector<8x128xbf16>
    %cst_93 = arith.constant dense<0.000000e+00> : vector<8x128xf32>
    %245 = tpu.matmul %244, %1, %cst_93 {dimension_numbers = #tpu.dot_dimension_numbers<[1], [0], [0], [1], [0, 0, 1, 1], [], []>} : vector<8x128xbf16>, vector<128x128xbf16>, vector<8x128xf32> -> vector<8x128xf32>
    %246 = arith.addf %242, %245 : vector<8x128xf32>
    %247 = math.tanh %246 : vector<8x128xf32>
    %cst_94 = arith.constant 1.000000e+00 : f32
    %248 = vector.broadcast %cst_94 : f32 to vector<8x128xf32>
    %249 = arith.subf %248, %241 : vector<8x128xf32>
    %250 = arith.mulf %249, %227 : vector<8x128xf32>
    %251 = arith.mulf %241, %247 : vector<8x128xf32>
    %252 = arith.addf %250, %251 : vector<8x128xf32>
    %253 = arith.index_cast %c5_i32 : i32 to index
    %c0_95 = arith.constant 0 : index
    %c0_96 = arith.constant 0 : index
    %254 = vector.load %arg1[%253, %c0_95, %c0_96] : memref<8x8x1xi32, #tpu.memory_space<vmem>>, vector<1x8x1xi32>
    %255 = vector.shape_cast %254 : vector<1x8x1xi32> to vector<8x1xi32>
    %256 = tpu.iota {dimensions = array<i32: 0>} : vector<9x8x1xi32>
    %257 = vector.shape_cast %255 : vector<8x1xi32> to vector<1x8x1xi32>
    %258 = vector.broadcast %257 : vector<1x8x1xi32> to vector<9x8x1xi32>
    %259 = arith.cmpi eq, %256, %258 : vector<9x8x1xi32>
    %260 = arith.extui %259 : vector<9x8x1xi1> to vector<9x8x1xi32>
    %261 = arith.sitofp %260 : vector<9x8x1xi32> to vector<9x8x1xf32>
    %c0_97 = arith.constant 0 : index
    %c0_98 = arith.constant 0 : index
    %c0_99 = arith.constant 0 : index
    %262 = vector.load %arg6[%c0_97, %c0_98, %c0_99] : memref<9x8x128xf32, #tpu.memory_space<vmem>>, vector<9x8x128xf32>
    %263 = vector.shape_cast %252 : vector<8x128xf32> to vector<1x8x128xf32>
    %264 = vector.broadcast %261 : vector<9x8x1xf32> to vector<9x8x128xf32>
    %265 = vector.broadcast %263 : vector<1x8x128xf32> to vector<9x8x128xf32>
    %266 = arith.mulf %264, %265 : vector<9x8x128xf32>
    %267 = arith.addf %262, %266 : vector<9x8x128xf32>
    %c0_100 = arith.constant 0 : index
    %c0_101 = arith.constant 0 : index
    %c0_102 = arith.constant 0 : index
    %268 = vector.load %arg6[%c0_100, %c0_101, %c0_102] : memref<9x8x128xf32, #tpu.memory_space<vmem>>, vector<9x8x128xf32>
    tpu.vector_store %arg6[%c0_100, %c0_101, %c0_102], %267 {strides = array<i32>} : memref<9x8x128xf32, #tpu.memory_space<vmem>>, vector<9x8x128xf32>,
    %c6_i32 = arith.constant 6 : i32
    %269 = arith.index_cast %c6_i32 : i32 to index
    %c0_103 = arith.constant 0 : index
    %c0_104 = arith.constant 0 : index
    %270 = vector.load %arg6[%269, %c0_103, %c0_104] : memref<9x8x128xf32, #tpu.memory_space<vmem>>, vector<1x8x128xf32>
    %271 = vector.shape_cast %270 : vector<1x8x128xf32> to vector<8x128xf32>
    %272 = arith.index_cast %c6_i32 : i32 to index
    %c0_105 = arith.constant 0 : index
    %c0_106 = arith.constant 0 : index
    %273 = vector.load %arg2[%272, %c0_105, %c0_106] : memref<8x8x384xf32, #tpu.memory_space<vmem>>, vector<1x8x384xf32>
    %274 = vector.shape_cast %273 : vector<1x8x384xf32> to vector<8x384xf32>
    %275 = vector.extract_strided_slice %274 {offsets = [0, 0], sizes = [8, 256], strides = [1, 1]} : vector<8x384xf32> to vector<8x256xf32>
    %276 = arith.truncf %271 : vector<8x128xf32> to vector<8x128xbf16>
    %cst_107 = arith.constant dense<0.000000e+00> : vector<8x256xf32>
    %277 = tpu.matmul %276, %0, %cst_107 {dimension_numbers = #tpu.dot_dimension_numbers<[1], [0], [0], [1], [0, 0, 1, 1], [], []>} : vector<8x128xbf16>, vector<128x256xbf16>, vector<8x256xf32> -> vector<8x256xf32>
    %278 = arith.addf %275, %277 : vector<8x256xf32>
    %279 = arith.negf %278 : vector<8x256xf32>
    %280 = math.exp %279 : vector<8x256xf32>
    %cst_108 = arith.constant 1.000000e+00 : f32
    %281 = vector.broadcast %cst_108 : f32 to vector<8x256xf32>
    %282 = arith.addf %281, %280 : vector<8x256xf32>
    %283 = arith.divf %281, %282 : vector<8x256xf32>
    %284 = vector.extract_strided_slice %283 {offsets = [0, 0], sizes = [8, 128], strides = [1, 1]} : vector<8x256xf32> to vector<8x128xf32>
    %285 = vector.extract_strided_slice %283 {offsets = [0, 128], sizes = [8, 128], strides = [1, 1]} : vector<8x256xf32> to vector<8x128xf32>
    %286 = vector.extract_strided_slice %274 {offsets = [0, 256], sizes = [8, 128], strides = [1, 1]} : vector<8x384xf32> to vector<8x128xf32>
    %287 = arith.mulf %284, %271 : vector<8x128xf32>
    %288 = arith.truncf %287 : vector<8x128xf32> to vector<8x128xbf16>
    %cst_109 = arith.constant dense<0.000000e+00> : vector<8x128xf32>
    %289 = tpu.matmul %288, %1, %cst_109 {dimension_numbers = #tpu.dot_dimension_numbers<[1], [0], [0], [1], [0, 0, 1, 1], [], []>} : vector<8x128xbf16>, vector<128x128xbf16>, vector<8x128xf32> -> vector<8x128xf32>
    %290 = arith.addf %286, %289 : vector<8x128xf32>
    %291 = math.tanh %290 : vector<8x128xf32>
    %cst_110 = arith.constant 1.000000e+00 : f32
    %292 = vector.broadcast %cst_110 : f32 to vector<8x128xf32>
    %293 = arith.subf %292, %285 : vector<8x128xf32>
    %294 = arith.mulf %293, %271 : vector<8x128xf32>
    %295 = arith.mulf %285, %291 : vector<8x128xf32>
    %296 = arith.addf %294, %295 : vector<8x128xf32>
    %297 = arith.index_cast %c6_i32 : i32 to index
    %c0_111 = arith.constant 0 : index
    %c0_112 = arith.constant 0 : index
    %298 = vector.load %arg1[%297, %c0_111, %c0_112] : memref<8x8x1xi32, #tpu.memory_space<vmem>>, vector<1x8x1xi32>
    %299 = vector.shape_cast %298 : vector<1x8x1xi32> to vector<8x1xi32>
    %300 = tpu.iota {dimensions = array<i32: 0>} : vector<9x8x1xi32>
    %301 = vector.shape_cast %299 : vector<8x1xi32> to vector<1x8x1xi32>
    %302 = vector.broadcast %301 : vector<1x8x1xi32> to vector<9x8x1xi32>
    %303 = arith.cmpi eq, %300, %302 : vector<9x8x1xi32>
    %304 = arith.extui %303 : vector<9x8x1xi1> to vector<9x8x1xi32>
    %305 = arith.sitofp %304 : vector<9x8x1xi32> to vector<9x8x1xf32>
    %c0_113 = arith.constant 0 : index
    %c0_114 = arith.constant 0 : index
    %c0_115 = arith.constant 0 : index
    %306 = vector.load %arg6[%c0_113, %c0_114, %c0_115] : memref<9x8x128xf32, #tpu.memory_space<vmem>>, vector<9x8x128xf32>
    %307 = vector.shape_cast %296 : vector<8x128xf32> to vector<1x8x128xf32>
    %308 = vector.broadcast %305 : vector<9x8x1xf32> to vector<9x8x128xf32>
    %309 = vector.broadcast %307 : vector<1x8x128xf32> to vector<9x8x128xf32>
    %310 = arith.mulf %308, %309 : vector<9x8x128xf32>
    %311 = arith.addf %306, %310 : vector<9x8x128xf32>
    %c0_116 = arith.constant 0 : index
    %c0_117 = arith.constant 0 : index
    %c0_118 = arith.constant 0 : index
    %312 = vector.load %arg6[%c0_116, %c0_117, %c0_118] : memref<9x8x128xf32, #tpu.memory_space<vmem>>, vector<9x8x128xf32>
    tpu.vector_store %arg6[%c0_116, %c0_117, %c0_118], %311 {strides = array<i32>} : memref<9x8x128xf32, #tpu.memory_space<vmem>>, vector<9x8x128xf32>,
    %c7_i32 = arith.constant 7 : i32
    %313 = arith.index_cast %c7_i32 : i32 to index
    %c0_119 = arith.constant 0 : index
    %c0_120 = arith.constant 0 : index
    %314 = vector.load %arg6[%313, %c0_119, %c0_120] : memref<9x8x128xf32, #tpu.memory_space<vmem>>, vector<1x8x128xf32>
    %315 = vector.shape_cast %314 : vector<1x8x128xf32> to vector<8x128xf32>
    %316 = arith.index_cast %c7_i32 : i32 to index
    %c0_121 = arith.constant 0 : index
    %c0_122 = arith.constant 0 : index
    %317 = vector.load %arg2[%316, %c0_121, %c0_122] : memref<8x8x384xf32, #tpu.memory_space<vmem>>, vector<1x8x384xf32>
    %318 = vector.shape_cast %317 : vector<1x8x384xf32> to vector<8x384xf32>
    %319 = vector.extract_strided_slice %318 {offsets = [0, 0], sizes = [8, 256], strides = [1, 1]} : vector<8x384xf32> to vector<8x256xf32>
    %320 = arith.truncf %315 : vector<8x128xf32> to vector<8x128xbf16>
    %cst_123 = arith.constant dense<0.000000e+00> : vector<8x256xf32>
    %321 = tpu.matmul %320, %0, %cst_123 {dimension_numbers = #tpu.dot_dimension_numbers<[1], [0], [0], [1], [0, 0, 1, 1], [], []>} : vector<8x128xbf16>, vector<128x256xbf16>, vector<8x256xf32> -> vector<8x256xf32>
    %322 = arith.addf %319, %321 : vector<8x256xf32>
    %323 = arith.negf %322 : vector<8x256xf32>
    %324 = math.exp %323 : vector<8x256xf32>
    %cst_124 = arith.constant 1.000000e+00 : f32
    %325 = vector.broadcast %cst_124 : f32 to vector<8x256xf32>
    %326 = arith.addf %325, %324 : vector<8x256xf32>
    %327 = arith.divf %325, %326 : vector<8x256xf32>
    %328 = vector.extract_strided_slice %327 {offsets = [0, 0], sizes = [8, 128], strides = [1, 1]} : vector<8x256xf32> to vector<8x128xf32>
    %329 = vector.extract_strided_slice %327 {offsets = [0, 128], sizes = [8, 128], strides = [1, 1]} : vector<8x256xf32> to vector<8x128xf32>
    %330 = vector.extract_strided_slice %318 {offsets = [0, 256], sizes = [8, 128], strides = [1, 1]} : vector<8x384xf32> to vector<8x128xf32>
    %331 = arith.mulf %328, %315 : vector<8x128xf32>
    %332 = arith.truncf %331 : vector<8x128xf32> to vector<8x128xbf16>
    %cst_125 = arith.constant dense<0.000000e+00> : vector<8x128xf32>
    %333 = tpu.matmul %332, %1, %cst_125 {dimension_numbers = #tpu.dot_dimension_numbers<[1], [0], [0], [1], [0, 0, 1, 1], [], []>} : vector<8x128xbf16>, vector<128x128xbf16>, vector<8x128xf32> -> vector<8x128xf32>
    %334 = arith.addf %330, %333 : vector<8x128xf32>
    %335 = math.tanh %334 : vector<8x128xf32>
    %cst_126 = arith.constant 1.000000e+00 : f32
    %336 = vector.broadcast %cst_126 : f32 to vector<8x128xf32>
    %337 = arith.subf %336, %329 : vector<8x128xf32>
    %338 = arith.mulf %337, %315 : vector<8x128xf32>
    %339 = arith.mulf %329, %335 : vector<8x128xf32>
    %340 = arith.addf %338, %339 : vector<8x128xf32>
    %341 = arith.index_cast %c7_i32 : i32 to index
    %c0_127 = arith.constant 0 : index
    %c0_128 = arith.constant 0 : index
    %342 = vector.load %arg1[%341, %c0_127, %c0_128] : memref<8x8x1xi32, #tpu.memory_space<vmem>>, vector<1x8x1xi32>
    %343 = vector.shape_cast %342 : vector<1x8x1xi32> to vector<8x1xi32>
    %344 = tpu.iota {dimensions = array<i32: 0>} : vector<9x8x1xi32>
    %345 = vector.shape_cast %343 : vector<8x1xi32> to vector<1x8x1xi32>
    %346 = vector.broadcast %345 : vector<1x8x1xi32> to vector<9x8x1xi32>
    %347 = arith.cmpi eq, %344, %346 : vector<9x8x1xi32>
    %348 = arith.extui %347 : vector<9x8x1xi1> to vector<9x8x1xi32>
    %349 = arith.sitofp %348 : vector<9x8x1xi32> to vector<9x8x1xf32>
    %c0_129 = arith.constant 0 : index
    %c0_130 = arith.constant 0 : index
    %c0_131 = arith.constant 0 : index
    %350 = vector.load %arg6[%c0_129, %c0_130, %c0_131] : memref<9x8x128xf32, #tpu.memory_space<vmem>>, vector<9x8x128xf32>
    %351 = vector.shape_cast %340 : vector<8x128xf32> to vector<1x8x128xf32>
    %352 = vector.broadcast %349 : vector<9x8x1xf32> to vector<9x8x128xf32>
    %353 = vector.broadcast %351 : vector<1x8x128xf32> to vector<9x8x128xf32>
    %354 = arith.mulf %352, %353 : vector<9x8x128xf32>
    %355 = arith.addf %350, %354 : vector<9x8x128xf32>
    %c0_132 = arith.constant 0 : index
    %c0_133 = arith.constant 0 : index
    %c0_134 = arith.constant 0 : index
    %356 = vector.load %arg6[%c0_132, %c0_133, %c0_134] : memref<9x8x128xf32, #tpu.memory_space<vmem>>, vector<9x8x128xf32>
    tpu.vector_store %arg6[%c0_132, %c0_133, %c0_134], %355 {strides = array<i32>} : memref<9x8x128xf32, #tpu.memory_space<vmem>>, vector<9x8x128xf32>,
    %c8_i32 = arith.constant 8 : i32
    %c0_135 = arith.constant 0 : index
    %c0_136 = arith.constant 0 : index
    %357 = vector.load %arg5[%c0_135, %c0_136] : memref<8x128xf32, #tpu.memory_space<vmem>>, vector<8x128xf32>
    tpu.vector_store %arg5[%c0_135, %c0_136], %340 {strides = array<i32>} : memref<8x128xf32, #tpu.memory_space<vmem>>, vector<8x128xf32>,
    return
  }
  func.func @transform_0(%arg0: i32) -> (i32, i32, i32) {
    %c0_i32 = arith.constant 0 : i32
    %c0_i32_0 = arith.constant 0 : i32
    %c0_i32_1 = arith.constant 0 : i32
    return %c0_i32, %arg0, %c0_i32_0 : i32, i32, i32
  }
  func.func @transform_1(%arg0: i32) -> (i32, i32, i32) {
    %c0_i32 = arith.constant 0 : i32
    %c0_i32_0 = arith.constant 0 : i32
    %c0_i32_1 = arith.constant 0 : i32
    return %c0_i32, %arg0, %c0_i32_0 : i32, i32, i32
  }
  func.func @transform_2(%arg0: i32) -> (i32, i32) {
    %c0_i32 = arith.constant 0 : i32
    %c0_i32_0 = arith.constant 0 : i32
    %c0_i32_1 = arith.constant 0 : i32
    return %c0_i32, %c0_i32_0 : i32, i32
  }
  func.func @transform_3(%arg0: i32) -> (i32, i32) {
    %c0_i32 = arith.constant 0 : i32
    %c0_i32_0 = arith.constant 0 : i32
    %c0_i32_1 = arith.constant 0 : i32
    return %c0_i32, %c0_i32_0 : i32, i32
  }
  func.func @transform_4(%arg0: i32) -> (i32, i32) {
    %c0_i32 = arith.constant 0 : i32
    %c0_i32_0 = arith.constant 0 : i32
    return %arg0, %c0_i32 : i32, i32
  }
}

</mosaic_0001>

<bundles_post_ra>
// kernel: tpu_custom_call.1
= control target key start
LH: loop header
LB: loop body
LE: loop exit
PB: predicated region body
PF: predicated region fallthrough
CT: control target
= control target key end

     0   :  { %9 = vsyncpa [#allocation4], 0  ;;  %s3298_s0 = inlined_call_operand.vmem [shape: s32[8,8,1], index: 0, kind: input, shape index: {}]   ;;  %s3299_s1 = inlined_call_operand.hbm [shape: f32[8,8,384], index: 1, kind: input, shape index: {}]   ;;  %s3300_s2 = inlined_call_operand.hbm [shape: bf16[128,256], index: 2, kind: input, shape index: {}]   ;;  %s3301_s3 = inlined_call_operand.vmem [shape: bf16[128,128], index: 3, kind: input, shape index: {}]   ;;  %s3302_s4 = inlined_call_operand.hbm [shape: f32[8,128], index: 4, kind: output, shape index: {}]  }
   0x1   :  { %10 = vsyncpa [#allocation7], 0 }
   0x2   :  { %11 = vsyncpa [#allocation5], 0  ;;  %s2592_s15 = smov [#allocation3]   ;;  %s2520_s19 = scalar_lea.hbm %s3299_s1, 3072 }
   0x3   :  { %s19_s16 = sshll.u32 %s2592_s15, 4  ;;  %p2521_p0 = scmp.ne.s32.totalorder %s3299_s1, %s2520_s19  ;;  %s20_s16 = int_to_ptr.vmem [resolvable:$true] %s19_s16 }
   0x4   :  { %p2524_p1 = scmp.lt.u32.totalorder %s2520_s19, %s3299_s1 }
   0x6   :  { %p2526_p2 = pnand %p2524_p1, %p2521_p0 }
   0x8   :  { %2529 = shalt.err (!%p2526_p2)
}
   0x9   :  { %s2530_s24 = scalar_lea.vmem %s20_s16, 3072  ;;  %p2535_p4 = scmp.lt.s32.totalorder %s20_s16, %s20_s16 }
   0xa   :  { %p2531_p3 = scmp.ne.s32.totalorder %s20_s16, %s2530_s24  ;;  %p2536_p5 = scmp.lt.s32.totalorder %s2530_s24, %s2530_s24 }
   0xc   :  { %p2537_p6 = por %p2536_p5, %p2535_p4 }
   0xe   :  { %p2538_p7 = pnand %p2537_p6, %p2531_p3 }
  0x10   :  { %2541 = shalt.err (!%p2538_p7)
}
  0x11   :  { %s2593_s25 = smov 384   ;;  %s2594_s26 = smov 24  }
  0x12   :  { %25 = dma.hbm_to_vmem [thread:$0]  %s3299_s1, 3072, %s20_s16, [#allocation4], %s2593_s25, %s2593_s25, %s2594_s26  }
  0x13   :  { %s2595_s29 = smov [#allocation6]   ;;  %s2542_s7 = scalar_lea.hbm %s3300_s2, 2048 }
  0x14   :  { %s31_s30 = sshll.u32 %s2595_s29, 4  ;;  %p2543_p8 = scmp.ne.s32.totalorder %s3300_s2, %s2542_s7  ;;  %s32_s30 = int_to_ptr.vmem [resolvable:$true] %s31_s30 }
  0x15   :  { %p2546_p9 = scmp.lt.u32.totalorder %s2542_s7, %s3300_s2 }
  0x17   :  { %p2548_p10 = pnand %p2546_p9, %p2543_p8 }
  0x19   :  { %2551 = shalt.err (!%p2548_p10)
}
  0x1a   :  { %s2552_s12 = scalar_lea.vmem %s32_s30, 2048  ;;  %p2557_p12 = scmp.lt.s32.totalorder %s32_s30, %s32_s30 }
  0x1b   :  { %p2553_p11 = scmp.ne.s32.totalorder %s32_s30, %s2552_s12  ;;  %p2558_p13 = scmp.lt.s32.totalorder %s2552_s12, %s2552_s12 }
  0x1d   :  { %p2559_p0 = por %p2558_p13, %p2557_p12 }
  0x1f   :  { %p2560_p1 = pnand %p2559_p0, %p2553_p11 }
  0x21   :  { %2563 = shalt.err (!%p2560_p1)
}
  0x22   :  { %s2596_s1 = smov 128   ;;  %s2597_s13 = smov 8  }
  0x23   :  { %37 = dma.hbm_to_vmem [thread:$0]  %s3300_s2, 2048, %s32_s30, [#allocation7], %s2596_s1, %s2596_s1, %s2597_s13  }
  0x24   :  { %2586 = dma.done.wait [#allocation4], 3072  }
  0x25   :  { %2587 = vsyncadd [#allocation4], 4294964224 }
  0x26   :  { %2588 = dma.done.wait [#allocation7], 2048  }
  0x27   :  { %2589 = vsyncadd [#allocation7], 4294965248  ;;  %v3305_v0 = vmov 0   ;;  %v2655_v1 = vld [vmem:[#allocation6 + $0x4] ss:$8 sps:$4 sm:$0xff]   ;;  %v2599_v17 = vmov 0.0|0.0  }
  0x28   :  { %205 = vmatprep.mubr.bf16.mxu0 %v3305_v0  ;;  %2352 = vset.pattern.permute.xlu0 %v3305_v0  ;;  %v2657_v2 = vld [vmem:[#allocation6] ss:$8 sps:$4 sm:$0xff]   ;;  %v2660_v3 = vld [vmem:[#allocation6 + $0x14] ss:$8 sps:$4 sm:$0xff]   ;;  %v2663_v4 = vld [vmem:[#allocation6 + $0x10] ss:$8 sps:$4 sm:$0xff]  }
  0x29   :  { %2358 = vset.pattern.permute.xlu1 %v3305_v0  ;;  %173 = vmatprep.subr.bf16.mxu0 %v2655_v1  ;;  %v2666_v5 = vld [vmem:[#allocation6 + $0x24] ss:$8 sps:$4 sm:$0xff]   ;;  %v2669_v6 = vld [vmem:[#allocation6 + $0x20] ss:$8 sps:$4 sm:$0xff]   ;;  %v2672_v7 = vld [vmem:[#allocation6 + $0x34] ss:$8 sps:$4 sm:$0xff]  }
  0x2a   :  { %174 = vmatpush1.bf16.msra.mxu0 %v2657_v2  ;;  %v2674_v8 = vld [vmem:[#allocation6 + $0x30] ss:$8 sps:$4 sm:$0xff]   ;;  %v2676_v9 = vld [vmem:[#allocation6 + $0x44] ss:$8 sps:$4 sm:$0xff]   ;;  %v2680_v10 = vld [vmem:[#allocation6 + $0x40] ss:$8 sps:$4 sm:$0xff]  }
  0x2b   :  { %175 = vmatprep.subr.bf16.mxu0 %v2660_v3  ;;  %v2684_v11 = vld [vmem:[#allocation6 + $0x54] ss:$8 sps:$4 sm:$0xff]   ;;  %v2687_v12 = vld [vmem:[#allocation6 + $0x50] ss:$8 sps:$4 sm:$0xff]   ;;  %v2690_v13 = vld [vmem:[#allocation6 + $0x64] ss:$8 sps:$4 sm:$0xff]  }
  0x2c   :  { %v2693_v14 = vld [vmem:[#allocation6 + $0x60] ss:$8 sps:$4 sm:$0xff]   ;;  %v2696_v15 = vld [vmem:[#allocation6 + $0x74] ss:$8 sps:$4 sm:$0xff]   ;;  %v2699_v16 = vld [vmem:[#allocation6 + $0x70] ss:$8 sps:$4 sm:$0xff]  }
  0x2d   :  { %v2724_v18 = vld [vmem:[%s3301_s3] sm:$0xff]   ;;  %v3303_v19 = vmov 0.0   ;;  %v2732_v20 = vld [vmem:[%s3301_s3 + $0x8] sm:$0xff]   ;;  %v2739_v21 = vld [vmem:[%s3301_s3 + $0x10] sm:$0xff]   ;;  %vm2601_vm0 = vmmov 0  }
  0x2e   :  { %176 = vmatpush1.bf16.msra.mxu0 %v2663_v4  ;;  %2181 = vmatprep.subr.bf16.mxu1 %v3303_v19  ;;  %v2746_v22 = vld [vmem:[%s3301_s3 + $0x18] sm:$0xff]   ;;  %v2753_v23 = vld [vmem:[%s3301_s3 + $0x20] sm:$0xff]   ;;  %v2760_v24 = vld [vmem:[%s3301_s3 + $0x28] sm:$0xff]  }
  0x2f   :  { %177 = vmatprep.subr.bf16.mxu0 %v2666_v5  ;;  %2182 = vmatpush3.bf16.msra.mxu1 %v2724_v18  ;;  %v2767_v25 = vld [vmem:[%s3301_s3 + $0x30] sm:$0xff]   ;;  %v2774_v26 = vld [vmem:[%s3301_s3 + $0x38] sm:$0xff]   ;;  %v2783_v27 = vld [vmem:[%s3298_s0] sm:$0xff] }
  0x30   :  { %2183 = vmatprep.subr.bf16.mxu1 %v3303_v19  ;;  %2197 = vmatprep.mubr.msk.bf16.mxu1 %vm2601_vm0, %v3303_v19  ;;  %v2788_v28 = vld [vmem:[%s3298_s0 + $0x8] sm:$0xff]  ;;  %vm326_vm1 = vcmp.eq.s32.totalorder %v2783_v27, 1  ;;  %vm327_vm2 = vcmp.eq.s32.totalorder %v2783_v27, 2  ;;  %vm329_vm4 = vcmp.eq.s32.totalorder %v2783_v27, 4  ;;  %vm328_vm6 = vcmp.eq.s32.totalorder %v2783_v27, 3  ;;  %v2806_v36 = vld [vmem:[%s3298_s0 + $0x18] sm:$0xff] }
  0x31   :  { %vm547_vm3 = vcmp.eq.s32.totalorder %v2788_v28, 2  ;;  %v2017_v29 = vsel %vm326_vm1, 1.0, %v3303_v19  ;;  %v2018_v30 = vsel %vm327_vm2, 1.0, %v3303_v19  ;;  %vm549_vm5 = vcmp.eq.s32.totalorder %v2788_v28, 4  ;;  %v2811_v37 = vld [vmem:[%s3298_s0 + $0x10] sm:$0xff]  ;;  %v2825_v43 = vld [vmem:[%s3298_s0 + $0x20] sm:$0xff] }
  0x32   :  { %178 = vmatpush1.bf16.msra.mxu0 %v2669_v6  ;;  %v2030_v31 = vsel %vm547_vm3, 1.0, %v3303_v19  ;;  %368 = vperm.xlu0 %2352, %v2017_v29   ;;  %v2020_v33 = vsel %vm329_vm4, 1.0, %v3303_v19  ;;  %v2032_v34 = vsel %vm549_vm5, 1.0, %v3303_v19  ;;  %v2019_v35 = vsel %vm328_vm6, 1.0, %v3303_v19  ;;  %v2851_v59 = vld [vmem:[%s3298_s0 + $0x28] sm:$0xff]  ;;  %v89_v62 = vld [vmem:[#allocation3] sm:$0xff] }
  0x33   :  { %179 = vmatprep.subr.bf16.mxu0 %v2672_v7  ;;  %2184 = vmatpush3.bf16.msra.mxu1 %v2732_v20  ;;  %v2353_v32 = vpack.i.bf16 %v2030_v31, %v2018_v30  ;;  %vm548_vm7 = vcmp.eq.s32.totalorder %v2788_v28, 3  ;;  %v2364_v39 = vpack.i.bf16 %v2032_v34, %v2020_v33  ;;  %vm768_vm8 = vcmp.eq.s32.totalorder %v2811_v37, 3 }
  0x34   :  { %2185 = vmatprep.subr.bf16.mxu1 %v3303_v19  ;;  %v2031_v38 = vsel %vm548_vm7, 1.0, %v3303_v19  ;;  %vm989_vm9 = vcmp.eq.s32.totalorder %v2806_v36, 4  ;;  %v2043_v41 = vsel %vm768_vm8, 1.0, %v3303_v19  ;;  %vm769_vm10 = vcmp.eq.s32.totalorder %v2811_v37, 4 }
  0x35   :  { %v2359_v40 = vpack.i.bf16 %v2031_v38, %v2019_v35  ;;  %vm330_vm11 = vcmp.eq.s32.totalorder %v2783_v27, 5  ;;  %vm550_vm12 = vcmp.eq.s32.totalorder %v2788_v28, 5  ;;  %v2056_v42 = vsel %vm989_vm9, 1.0, %v3303_v19  ;;  %v90_v38 = vld [vmem:[#allocation3 + $0x8] sm:$0xff] }
  0x36   :  { %180 = vmatpush1.bf16.msra.mxu0 %v2674_v8  ;;  %2354 = vperm.xlu0 %2352, %v2353_v32   ;;  %vm770_vm13 = vcmp.eq.s32.totalorder %v2811_v37, 5  ;;  %v2044_v44 = vsel %vm769_vm10, 1.0, %v3303_v19  ;;  %v2021_v45 = vsel %vm330_vm11, 1.0, %v3303_v19  ;;  %v2033_v46 = vsel %vm550_vm12, 1.0, %v3303_v19 }
  0x37   :  { %181 = vmatprep.subr.bf16.mxu0 %v2676_v9  ;;  %2186 = vmatpush3.bf16.msra.mxu1 %v2739_v21  ;;  %v2045_v47 = vsel %vm770_vm13, 1.0, %v3303_v19  ;;  %vm1210_vm14 = vcmp.eq.s32.totalorder %v2825_v43, 5  ;;  %v2369_v48 = vpack.i.bf16 %v2033_v46, %v2021_v45  ;;  %vm990_vm15 = vcmp.eq.s32.totalorder %v2806_v36, 5 }
  0x38   :  { %2187 = vmatprep.subr.bf16.mxu1 %v3303_v19  ;;  %2360 = vperm.xlu1 %2358, %v2359_v40   ;;  %vm331_vm1 = vcmp.eq.s32.totalorder %v2783_v27, 6  ;;  %vm551_vm2 = vcmp.eq.s32.totalorder %v2788_v28, 6  ;;  %v2069_v49 = vsel %vm1210_vm14, 1.0, %v3303_v19  ;;  %vm771_vm3 = vcmp.eq.s32.totalorder %v2811_v37, 6 }
  0x39   :  { %v2057_v50 = vsel %vm990_vm15, 1.0, %v3303_v19  ;;  %v2022_v51 = vsel %vm331_vm1, 1.0, %v3303_v19  ;;  %v2034_v52 = vsel %vm551_vm2, 1.0, %v3303_v19  ;;  %v2046_v53 = vsel %vm771_vm3, 1.0, %v3303_v19 }
  0x3a   :  { %182 = vmatpush1.bf16.msra.mxu0 %v2680_v10  ;;  %2365 = vperm.xlu0 %2352, %v2364_v39   ;;  %vm1211_vm4 = vcmp.eq.s32.totalorder %v2825_v43, 6  ;;  %vm332_vm5 = vcmp.eq.s32.totalorder %v2783_v27, 7  ;;  %vm552_vm6 = vcmp.eq.s32.totalorder %v2788_v28, 7  ;;  %v2374_v54 = vpack.i.bf16 %v2034_v52, %v2022_v51 }
  0x3b   :  { %183 = vmatprep.subr.bf16.mxu0 %v2684_v11  ;;  %2188 = vmatpush3.bf16.msra.mxu1 %v2746_v22  ;;  %v2070_v55 = vsel %vm1211_vm4, 1.0, %v3303_v19  ;;  %v2023_v56 = vsel %vm332_vm5, 1.0, %v3303_v19  ;;  %v2035_v57 = vsel %vm552_vm6, 1.0, %v3303_v19  ;;  %vm992_vm7 = vcmp.eq.s32.totalorder %v2806_v36, 7 }
  0x3c   :  { %2189 = vmatprep.subr.bf16.mxu1 %v3303_v19  ;;  %818 = vperm.xlu1 %2358, %v2043_v41   ;;  %v2379_v58 = vpack.i.bf16 %v2035_v57, %v2023_v56  ;;  %v2059_v60 = vsel %vm992_vm7, 1.0, %v3303_v19  ;;  %vm1432_vm8 = vcmp.eq.s32.totalorder %v2851_v59, 7  ;;  %vm991_vm9 = vcmp.eq.s32.totalorder %v2806_v36, 6 }
  0x3d   :  { %v2083_v61 = vsel %vm1432_vm8, 1.0, %v3303_v19  ;;  %vm1431_vm10 = vcmp.eq.s32.totalorder %v2851_v59, 6  ;;  %vm772_vm11 = vcmp.eq.s32.totalorder %v2811_v37, 7  ;;  %vm1212_vm12 = vcmp.eq.s32.totalorder %v2825_v43, 7 }
  0x3e   :  { %184 = vmatpush1.bf16.msra.mxu0 %v2687_v12  ;;  %1043 = vperm.xlu0 %2352, %v2056_v42  }
  0x3f   :  { %185 = vmatprep.subr.bf16.mxu0 %v2690_v13  ;;  %2190 = vmatpush3.bf16.msra.mxu1 %v2753_v23 }
  0x40   :  { %2191 = vmatprep.subr.bf16.mxu1 %v3303_v19  ;;  %823 = vperm.xlu1 %2358, %v2044_v44   ;;  %v91_v44 = vld [vmem:[#allocation3 + $0x10] sm:$0xff] }
  0x42   :  { %186 = vmatpush1.bf16.msra.mxu0 %v2693_v14  ;;  %828 = vperm.xlu0 %2352, %v2045_v47  }
  0x43   :  { %187 = vmatprep.subr.bf16.mxu0 %v2696_v15  ;;  %2192 = vmatpush3.bf16.msra.mxu1 %v2760_v24 }
  0x44   :  { %2193 = vmatprep.subr.bf16.mxu1 %v3303_v19  ;;  %2370 = vperm.xlu1 %2358, %v2369_v48  }
  0x46   :  { %188 = vmatpush1.bf16.msra.mxu0 %v2699_v16  ;;  %1268 = vperm.xlu0 %2352, %v2069_v49  }
  0x47   :  { %440 = vmatprep.subr.bf16.mxu0 %v2655_v1  ;;  %2194 = vmatpush3.bf16.msra.mxu1 %v2767_v25 }
  0x48   :  { %2195 = vmatprep.subr.bf16.mxu1 %v3303_v19  ;;  %1048 = vperm.xlu1 %2358, %v2057_v50  }
  0x49   :  { %206 = vmatmul.mubr.bf16.vlgmr.msra.gmra.mrb[0].mxu0 %v2599_v17 }
  0x4a   :  { %441 = vmatpush1.bf16.msra.mxu0 %v2657_v2  ;;  %472 = vmatprep.mubr.bf16.mxu0 %v3305_v0 }
  0x4b   :  { %442 = vmatprep.subr.bf16.mxu0 %v2660_v3  ;;  %2196 = vmatpush3.bf16.msra.mxu1 %v2774_v26 }
  0x4c   :  { %2201 = vmatprep.subr.bf16.mxu1 %v3303_v19  ;;  %833 = vperm.xlu0 %2352, %v2046_v53  }
  0x4d   :  { %2375 = vperm.xlu1 %2358, %v2374_v54  }
  0x4e   :  { %443 = vmatpush1.bf16.msra.mxu0 %v2663_v4 }
  0x4f   :  { %444 = vmatprep.subr.bf16.mxu0 %v2666_v5 }
  0x50   :  { %1273 = vperm.xlu0 %2352, %v2070_v55  }
  0x52   :  { %445 = vmatpush1.bf16.msra.mxu0 %v2669_v6 }
  0x53   :  { %446 = vmatprep.subr.bf16.mxu0 %v2672_v7 }
  0x54   :  { %2380 = vperm.xlu0 %2352, %v2379_v58  }
  0x56   :  { %447 = vmatpush1.bf16.msra.mxu0 %v2674_v8 }
  0x57   :  { %448 = vmatprep.subr.bf16.mxu0 %v2676_v9 }
  0x58   :  { %1058 = vperm.xlu0 %2352, %v2059_v60   ;;  %v436_v60 = vld [vmem:[#allocation3 + $0x18] sm:$0xff] }
  0x5a   :  { %449 = vmatpush1.bf16.msra.mxu0 %v2680_v10 }
  0x5b   :  { %450 = vmatprep.subr.bf16.mxu0 %v2684_v11 }
  0x5c   :  { %1498 = vperm.xlu0 %2352, %v2083_v61  }
  0x5e   :  { %451 = vmatpush1.bf16.msra.mxu0 %v2687_v12 }
  0x5f   :  { %452 = vmatprep.subr.bf16.mxu0 %v2690_v13 }
  0x62   :  { %453 = vmatpush1.bf16.msra.mxu0 %v2693_v14 }
  0x63   :  { %454 = vmatprep.subr.bf16.mxu0 %v2696_v15 }
  0x66   :  { %455 = vmatpush1.bf16.msra.mxu0 %v2699_v16 }
  0x67   :  { %660 = vmatprep.subr.bf16.mxu0 %v2655_v1 }
  0xb1   :  { %v369_v56 = vpop.permute.xlu0 %368 }
 0x11c   :  { %v207_v63 = vpop.f32.mrb[0].mxu0 }
 0x11d   :  { %v214_v17 = vadd.f32 %v207_v63, %v89_v62  ;;  %v209_v27 = vpop.f32.mrb[1].mxu0 }
 0x11e   :  { %v211_v28 = vpop.f32.mrb[2].mxu0  ;;  %v215_v39 = vadd.f32 %v209_v27, %v90_v38 }
 0x11f   :  { %v2006_v29 = vmul.f32 -1.442695, %v214_v17  ;;  %v212_v30 = vpop.f32.mrb[3].mxu0 }
 0x120   :  { %v2007_v40 = vmul.f32 -1.442695, %v215_v39 }
 0x121   :  { %2416 = vpow2.f32 %v2006_v29 }
 0x12b   :  { %v2417_v31 = vpop.eup %2416 }
 0x12c   :  { %v222_v32 = vadd.f32 1.0, %v2417_v31 }
 0x12e   :  { %2418 = vrcp.f32 %v222_v32 }
 0x12f   :  { %2420 = vpow2.f32 %v2007_v40 }
 0x138   :  { %v2419_v33 = vpop.eup %2418 }
 0x139   :  { %v228_v34 = vmul.f32 0.0, %v2419_v33  ;;  %v2421_v41 = vpop.eup %2420 }
 0x13a   :  { %v223_v42 = vadd.f32 1.0, %v2421_v41 }
 0x13b   :  { %v229_v35 = vpack.c.bf16 %v228_v34, %v228_v34  ;;  %v2355_v34 = vpop.permute.xlu0 %2354 }
 0x13c   :  { %2422 = vrcp.f32 %v223_v42  ;;  %v2361_v42 = vpop.permute.xlu1 %2360 }
 0x13d   :  { %2198 = vmatmul.mubr.bf16.vlgmr.msra.gmra.mrb[0].mxu1 %v229_v35  ;;  %v437_v35 = vld [vmem:[#allocation3 + $0x20] sm:$0xff] }
 0x13e   :  { %2202 = vmatpush3.bf16.msra.mxu1 %v2724_v18  ;;  %2217 = vmatprep.mubr.msk.bf16.mxu1 %vm2601_vm0, %v3303_v19 }
 0x13f   :  { %2203 = vmatprep.subr.bf16.mxu1 %v3303_v19  ;;  %v2366_v39 = vpop.permute.xlu0 %2365 }
 0x142   :  { %2204 = vmatpush3.bf16.msra.mxu1 %v2732_v20 }
 0x143   :  { %2205 = vmatprep.subr.bf16.mxu1 %v3303_v19  ;;  %v2917_v41 = vpop.permute.xlu0 %1043 }
 0x146   :  { %2206 = vmatpush3.bf16.msra.mxu1 %v2739_v21  ;;  %v2423_v50 = vpop.eup %2422 }
 0x147   :  { %2207 = vmatprep.subr.bf16.mxu1 %v3303_v19  ;;  %v320_v51 = vsub.f32 1.0, %v2423_v50 }
 0x149   :  { %v321_v53 = vmul.f32 0.0, %v320_v51 }
 0x14a   :  { %2208 = vmatpush3.bf16.msra.mxu1 %v2746_v22 }
 0x14b   :  { %2209 = vmatprep.subr.bf16.mxu1 %v3303_v19 }
 0x14e   :  { %2210 = vmatpush3.bf16.msra.mxu1 %v2753_v23 }
 0x14f   :  { %2211 = vmatprep.subr.bf16.mxu1 %v3303_v19 }
 0x152   :  { %2212 = vmatpush3.bf16.msra.mxu1 %v2760_v24 }
 0x153   :  { %2213 = vmatprep.subr.bf16.mxu1 %v3303_v19 }
 0x156   :  { %2214 = vmatpush3.bf16.msra.mxu1 %v2767_v25 }
 0x157   :  { %2215 = vmatprep.subr.bf16.mxu1 %v3303_v19 }
 0x15a   :  { %2216 = vmatpush3.bf16.msra.mxu1 %v2774_v26 }
 0x15b   :  { %2221 = vmatprep.subr.bf16.mxu1 %v3303_v19 }
 0x210   :  { %v312_v45 = vpop.f32.mrb[0].mxu1 }
 0x211   :  { %v318_v46 = vadd.f32 %v312_v45, %v91_v44  ;;  %v2199_v47 = vpop.f32.mrb[1].mxu1  ;;  %v2919_v44 = vpop.permute.xlu0 %828 }
 0x212   :  { %v315_v48 = vpop.f32.mrb[2].mxu1  ;;  %v2921_v45 = vpop.permute.xlu1 %818 }
 0x213   :  { %2424 = vtanh.f32 %v318_v46  ;;  %v2200_v49 = vpop.f32.mrb[3].mxu1 }
 0x215   :  { %v2923_v47 = vpop.permute.xlu0 %1268 }
 0x216   :  { %3307 = vst [vmem:[#allocation12_spill] sm:$0xff] %v2923_v47  ;;  %v2925_v49 = vpop.permute.xlu1 %823 }
 0x219   :  { %v2927_v51 = vpop.permute.xlu0 %833 }
 0x21d   :  { %v2425_v52 = vpop.eup %2424 }
 0x21e   :  { %v322_v54 = vmul.f32 %v2425_v52, %v2423_v50  ;;  %v438_v50 = vld [vmem:[#allocation3 + $0x28] sm:$0xff]  ;;  %v2371_v52 = vpop.permute.xlu1 %2370 }
 0x220   :  { %v2874_v55 = vadd.f32 %v322_v54, %v321_v53 }
 0x222   :  { %v2877_v57 = vmul.f32 %v369_v56, %v2874_v55 }
 0x224   :  { %v439_v58 = vpack.c.bf16 %v2877_v57, %v2877_v57 }
 0x226   :  { %473 = vmatmul.mubr.bf16.vlgmr.msra.gmra.mrb[4].mxu0 %v439_v58 }
 0x227   :  { %661 = vmatpush1.bf16.msra.mxu0 %v2657_v2  ;;  %692 = vmatprep.mubr.bf16.mxu0 %v3305_v0 }
 0x228   :  { %662 = vmatprep.subr.bf16.mxu0 %v2660_v3 }
 0x22b   :  { %663 = vmatpush1.bf16.msra.mxu0 %v2663_v4 }
 0x22c   :  { %664 = vmatprep.subr.bf16.mxu0 %v2666_v5 }
 0x22f   :  { %665 = vmatpush1.bf16.msra.mxu0 %v2669_v6 }
 0x230   :  { %666 = vmatprep.subr.bf16.mxu0 %v2672_v7 }
 0x233   :  { %667 = vmatpush1.bf16.msra.mxu0 %v2674_v8 }
 0x234   :  { %668 = vmatprep.subr.bf16.mxu0 %v2676_v9 }
 0x237   :  { %669 = vmatpush1.bf16.msra.mxu0 %v2680_v10 }
 0x238   :  { %670 = vmatprep.subr.bf16.mxu0 %v2684_v11 }
 0x23b   :  { %671 = vmatpush1.bf16.msra.mxu0 %v2687_v12 }
 0x23c   :  { %672 = vmatprep.subr.bf16.mxu0 %v2690_v13 }
 0x23f   :  { %673 = vmatpush1.bf16.msra.mxu0 %v2693_v14 }
 0x240   :  { %674 = vmatprep.subr.bf16.mxu0 %v2696_v15 }
 0x243   :  { %675 = vmatpush1.bf16.msra.mxu0 %v2699_v16 }
 0x244   :  { %880 = vmatprep.subr.bf16.mxu0 %v2655_v1 }
 0x2f9   :  { %v474_v61 = vpop.f32.mrb[4].mxu0 }
 0x2fa   :  { %v481_v62 = vadd.f32 %v474_v61, %v436_v60  ;;  %v476_v63 = vpop.f32.mrb[5].mxu0  ;;  %v2929_v61 = vpop.permute.xlu0 %1273 }
 0x2fb   :  { %v478_v17 = vpop.f32.mrb[6].mxu0  ;;  %v482_v38 = vadd.f32 %v476_v63, %v437_v35  ;;  %3308 = vst [vmem:[#allocation13_spill] sm:$0xff] %v2929_v61  ;;  %v2363_v35 = vunpack.i.h.bf16 %v2361_v42 }
 0x2fc   :  { %v2025_v27 = vmul.f32 -1.442695, %v481_v62  ;;  %v479_v28 = vpop.f32.mrb[7].mxu0  ;;  %v2931_v62 = vpop.permute.xlu1 %1048 }
 0x2fd   :  { %v2026_v40 = vmul.f32 -1.442695, %v482_v38  ;;  %3309 = vst [vmem:[#allocation14_spill] sm:$0xff] %v2931_v62 }
 0x2fe   :  { %2426 = vpow2.f32 %v2025_v27  ;;  %v2381_v27 = vpop.permute.xlu0 %2380 }
 0x300   :  { %v2376_v28 = vpop.permute.xlu1 %2375 }
 0x308   :  { %v2427_v29 = vpop.eup %2426 }
 0x309   :  { %v489_v30 = vadd.f32 1.0, %v2427_v29 }
 0x30b   :  { %2428 = vrcp.f32 %v489_v30  ;;  %v2356_v30 = vunpack.i.l.bf16 %v2355_v34 }
 0x30c   :  { %2430 = vpow2.f32 %v2026_v40 }
 0x30d   :  { %v408_v0 = vmul.f32 %v2356_v30, %v2874_v55 }
 0x315   :  { %v2429_v31 = vpop.eup %2428 }
 0x316   :  { %v495_v32 = vmul.f32 %v2429_v31, %v2877_v57  ;;  %v2431_v46 = vpop.eup %2430  ;;  %v2367_v31 = vunpack.i.l.bf16 %v2366_v39 }
 0x317   :  { %v490_v48 = vadd.f32 1.0, %v2431_v46  ;;  %v2373_v46 = vunpack.i.h.bf16 %v2371_v52 }
 0x318   :  { %v496_v33 = vpack.c.bf16 %v495_v32, %v495_v32  ;;  %v2362_v32 = vunpack.i.l.bf16 %v2361_v42  ;;  %v410_v47 = vmul.f32 %v2367_v31, %v2874_v55 }
 0x319   :  { %2432 = vrcp.f32 %v490_v48  ;;  %v2372_v48 = vunpack.i.l.bf16 %v2371_v52 }
 0x31a   :  { %2218 = vmatmul.mubr.bf16.vlgmr.msra.gmra.mrb[4].mxu1 %v496_v33  ;;  %v2382_v33 = vunpack.i.l.bf16 %v2381_v27  ;;  %v409_v61 = vmul.f32 %v2362_v32, %v2874_v55 }
 0x31b   :  { %2222 = vmatpush3.bf16.msra.mxu1 %v2724_v18  ;;  %2237 = vmatprep.mubr.msk.bf16.mxu1 %vm2601_vm0, %v3303_v19  ;;  %v411_v52 = vmul.f32 %v2372_v48, %v2874_v55 }
 0x31c   :  { %2223 = vmatprep.subr.bf16.mxu1 %v3303_v19 }
 0x31f   :  { %2224 = vmatpush3.bf16.msra.mxu1 %v2732_v20 }
 0x320   :  { %2225 = vmatprep.subr.bf16.mxu1 %v3303_v19 }
 0x323   :  { %2226 = vmatpush3.bf16.msra.mxu1 %v2739_v21  ;;  %v2433_v63 = vpop.eup %2432 }
 0x324   :  { %2227 = vmatprep.subr.bf16.mxu1 %v3303_v19  ;;  %v539_v17 = vsub.f32 1.0, %v2433_v63 }
 0x326   :  { %v540_v38 = vmul.f32 %v539_v17, %v2877_v57 }
 0x327   :  { %2228 = vmatpush3.bf16.msra.mxu1 %v2746_v22 }
 0x328   :  { %2229 = vmatprep.subr.bf16.mxu1 %v3303_v19 }
 0x32b   :  { %2230 = vmatpush3.bf16.msra.mxu1 %v2753_v23 }
 0x32c   :  { %2231 = vmatprep.subr.bf16.mxu1 %v3303_v19 }
 0x32f   :  { %2232 = vmatpush3.bf16.msra.mxu1 %v2760_v24 }
 0x330   :  { %2233 = vmatprep.subr.bf16.mxu1 %v3303_v19 }
 0x333   :  { %2234 = vmatpush3.bf16.msra.mxu1 %v2767_v25 }
 0x334   :  { %2235 = vmatprep.subr.bf16.mxu1 %v3303_v19 }
 0x337   :  { %2236 = vmatpush3.bf16.msra.mxu1 %v2774_v26 }
 0x338   :  { %2241 = vmatprep.subr.bf16.mxu1 %v3303_v19  ;;  %v413_v19 = vmul.f32 %v2382_v33, %v2874_v55 }
 0x3ed   :  { %v531_v53 = vpop.f32.mrb[4].mxu1 }
 0x3ee   :  { %v537_v54 = vadd.f32 %v531_v53, %v438_v50  ;;  %v2219_v56 = vpop.f32.mrb[5].mxu1  ;;  %v2378_v50 = vunpack.i.h.bf16 %v2376_v28  ;;  %v2377_v53 = vunpack.i.l.bf16 %v2376_v28 }
 0x3ef   :  { %v534_v58 = vpop.f32.mrb[6].mxu1  ;;  %v2368_v56 = vunpack.i.h.bf16 %v2366_v39 }
 0x3f0   :  { %2434 = vtanh.f32 %v537_v54  ;;  %v2220_v60 = vpop.f32.mrb[7].mxu1  ;;  %v2357_v54 = vunpack.i.h.bf16 %v2355_v34  ;;  %v2383_v58 = vunpack.i.h.bf16 %v2381_v27  ;;  %v412_v17 = vmul.f32 %v2377_v53, %v2874_v55 }
 0x3f1   :  { %v3310_v55 = vmov 0  }
 0x3fa   :  { %v2435_v29 = vpop.eup %2434 }
 0x3fb   :  { %v541_v40 = vmul.f32 %v2435_v29, %v2433_v63 }
 0x3fd   :  { %v542_v60 = vadd.f32 %v541_v40, %v540_v38 }
 0x3ff   :  { %v628_v42 = vmul.f32 %v2357_v54, %v542_v60  ;;  %v633_v62 = vmul.f32 %v2383_v58, %v542_v60  ;;  %v629_v57 = vmul.f32 %v2363_v35, %v542_v60  ;;  %v630_v63 = vmul.f32 %v2368_v56, %v542_v60  ;;  %v656_v35 = vld [vmem:[#allocation3 + $0x30] sm:$0xff] }
 0x400   :  { %v631_v34 = vmul.f32 %v2373_v46, %v542_v60  ;;  %v632_v39 = vmul.f32 %v2378_v50, %v542_v60  ;;  %v657_v60 = vld [vmem:[#allocation3 + $0x38] sm:$0xff] }
 0x401   :  { %v2940_v27 = vadd.f32 %v628_v42, %v408_v0  ;;  %v2942_v28 = vadd.f32 %v633_v62, %v413_v19  ;;  %v2944_v29 = vadd.f32 %v629_v57, %v409_v61  ;;  %v2946_v30 = vadd.f32 %v630_v63, %v410_v47  ;;  %v2087_v62 = vld [vmem:[%s3298_s0 + $0x30] sm:$0xff] }
 0x402   :  { %v2948_v32 = vadd.f32 %v631_v34, %v411_v52  ;;  %v2950_v31 = vadd.f32 %v632_v39, %v412_v17  ;;  %v3311_v0 = vmov 0.0   ;;  %vm1652_vm13 = vcmp.eq.s32.totalorder %v2087_v62, 7  ;;  %v658_v17 = vld [vmem:[#allocation3 + $0x40] sm:$0xff] }
 0x403   :  { %v659_v33 = vpack.c.bf16 %v2940_v27, %v2940_v27  ;;  %v2058_v19 = vsel %vm991_vm9, 1.0, %v3311_v0  ;;  %v2082_v47 = vsel %vm1431_vm10, 1.0, %v3311_v0  ;;  %v2047_v61 = vsel %vm772_vm11, 1.0, %v3311_v0 }
 0x404   :  { %1053 = vperm.xlu1 %2358, %v2058_v19   ;;  %v2071_v36 = vsel %vm1212_vm12, 1.0, %v3311_v0  ;;  %v2095_v59 = vsel %vm1652_vm13, 1.0, %v3311_v0 }
 0x405   :  { %693 = vmatmul.mubr.bf16.vlgmr.msra.gmra.mrb[8].mxu0 %v659_v33 }
 0x406   :  { %881 = vmatpush1.bf16.msra.mxu0 %v2657_v2  ;;  %912 = vmatprep.mubr.bf16.mxu0 %v3310_v55 }
 0x407   :  { %882 = vmatprep.subr.bf16.mxu0 %v2660_v3 }
 0x408   :  { %1493 = vperm.xlu1 %2358, %v2082_v47  }
 0x40a   :  { %883 = vmatpush1.bf16.msra.mxu0 %v2663_v4 }
 0x40b   :  { %884 = vmatprep.subr.bf16.mxu0 %v2666_v5 }
 0x40c   :  { %838 = vperm.xlu1 %2358, %v2047_v61  }
 0x40e   :  { %885 = vmatpush1.bf16.msra.mxu0 %v2669_v6 }
 0x40f   :  { %886 = vmatprep.subr.bf16.mxu0 %v2672_v7 }
 0x410   :  { %1278 = vperm.xlu1 %2358, %v2071_v36  }
 0x412   :  { %887 = vmatpush1.bf16.msra.mxu0 %v2674_v8 }
 0x413   :  { %888 = vmatprep.subr.bf16.mxu0 %v2676_v9 }
 0x414   :  { %1718 = vperm.xlu1 %2358, %v2095_v59  }
 0x416   :  { %889 = vmatpush1.bf16.msra.mxu0 %v2680_v10 }
 0x417   :  { %890 = vmatprep.subr.bf16.mxu0 %v2684_v11 }
 0x41a   :  { %891 = vmatpush1.bf16.msra.mxu0 %v2687_v12 }
 0x41b   :  { %892 = vmatprep.subr.bf16.mxu0 %v2690_v13 }
 0x41e   :  { %893 = vmatpush1.bf16.msra.mxu0 %v2693_v14 }
 0x41f   :  { %894 = vmatprep.subr.bf16.mxu0 %v2696_v15 }
 0x422   :  { %895 = vmatpush1.bf16.msra.mxu0 %v2699_v16 }
 0x423   :  { %1100 = vmatprep.subr.bf16.mxu0 %v2655_v1 }
 0x483   :  { %v3002_v61 = vpop.permute.xlu1 %1053 }
 0x487   :  { %v3004_v59 = vpop.permute.xlu1 %1493 }
 0x4d8   :  { %v694_v38 = vpop.f32.mrb[8].mxu0 }
 0x4d9   :  { %v701_v37 = vadd.f32 %v694_v38, %v656_v35  ;;  %v696_v40 = vpop.f32.mrb[9].mxu0 }
 0x4da   :  { %v698_v46 = vpop.f32.mrb[10].mxu0  ;;  %v702_v42 = vadd.f32 %v696_v40, %v657_v60 }
 0x4db   :  { %v2037_v48 = vmul.f32 -1.442695, %v701_v37  ;;  %v699_v50 = vpop.f32.mrb[11].mxu0  ;;  %v839_v46 = vpop.permute.xlu1 %838 }
 0x4dc   :  { %v2038_v57 = vmul.f32 -1.442695, %v702_v42 }
 0x4dd   :  { %2436 = vpow2.f32 %v2037_v48 }
 0x4e7   :  { %v2437_v43 = vpop.eup %2436 }
 0x4e8   :  { %v709_v53 = vadd.f32 1.0, %v2437_v43 }
 0x4ea   :  { %2438 = vrcp.f32 %v709_v53 }
 0x4eb   :  { %2440 = vpow2.f32 %v2038_v57  ;;  %v878_v57 = vld [vmem:[#allocation3 + $0x58] sm:$0xff] }
 0x4f4   :  { %v2439_v54 = vpop.eup %2438 }
 0x4f5   :  { %v715_v56 = vmul.f32 %v2439_v54, %v2940_v27  ;;  %v2441_v63 = vpop.eup %2440 }
 0x4f6   :  { %v710_v52 = vadd.f32 1.0, %v2441_v63 }
 0x4f7   :  { %v716_v58 = vpack.c.bf16 %v715_v56, %v715_v56 }
 0x4f8   :  { %2442 = vrcp.f32 %v710_v52 }
 0x4f9   :  { %2238 = vmatmul.mubr.bf16.vlgmr.msra.gmra.mrb[8].mxu1 %v716_v58 }
 0x4fa   :  { %2242 = vmatpush3.bf16.msra.mxu1 %v2724_v18  ;;  %2257 = vmatprep.mubr.msk.bf16.mxu1 %vm2601_vm0, %v3311_v0 }
 0x4fb   :  { %2243 = vmatprep.subr.bf16.mxu1 %v3311_v0 }
 0x4fe   :  { %2244 = vmatpush3.bf16.msra.mxu1 %v2732_v20 }
 0x4ff   :  { %2245 = vmatprep.subr.bf16.mxu1 %v3311_v0 }
 0x502   :  { %2246 = vmatpush3.bf16.msra.mxu1 %v2739_v21  ;;  %v2443_v62 = vpop.eup %2442 }
 0x503   :  { %2247 = vmatprep.subr.bf16.mxu1 %v3311_v0  ;;  %v759_v36 = vsub.f32 1.0, %v2443_v62 }
 0x505   :  { %v760_v37 = vmul.f32 %v759_v36, %v2940_v27 }
 0x506   :  { %2248 = vmatpush3.bf16.msra.mxu1 %v2746_v22 }
 0x507   :  { %2249 = vmatprep.subr.bf16.mxu1 %v3311_v0 }
 0x50a   :  { %2250 = vmatpush3.bf16.msra.mxu1 %v2753_v23 }
 0x50b   :  { %2251 = vmatprep.subr.bf16.mxu1 %v3311_v0 }
 0x50e   :  { %2252 = vmatpush3.bf16.msra.mxu1 %v2760_v24 }
 0x50f   :  { %2253 = vmatprep.subr.bf16.mxu1 %v3311_v0 }
 0x512   :  { %2254 = vmatpush3.bf16.msra.mxu1 %v2767_v25 }
 0x513   :  { %2255 = vmatprep.subr.bf16.mxu1 %v3311_v0 }
 0x516   :  { %2256 = vmatpush3.bf16.msra.mxu1 %v2774_v26 }
 0x517   :  { %2261 = vmatprep.subr.bf16.mxu1 %v3311_v0 }
 0x5cc   :  { %v751_v34 = vpop.f32.mrb[8].mxu1 }
 0x5cd   :  { %v757_v39 = vadd.f32 %v751_v34, %v658_v17  ;;  %v2239_v33 = vpop.f32.mrb[9].mxu1 }
 0x5ce   :  { %v754_v19 = vpop.f32.mrb[10].mxu1 }
 0x5cf   :  { %2444 = vtanh.f32 %v757_v39  ;;  %v2240_v47 = vpop.f32.mrb[11].mxu1 }
 0x5d9   :  { %v2445_v35 = vpop.eup %2444 }
 0x5da   :  { %v761_v38 = vmul.f32 %v2445_v35, %v2443_v62 }
 0x5dc   :  { %v762_v40 = vadd.f32 %v761_v38, %v760_v37  ;;  %v1059_v38 = vpop.permute.xlu0 %1058 }
 0x5de   :  { %v853_v48 = vmul.f32 %v839_v46, %v762_v40  ;;  %v849_v50 = vmul.f32 %v2921_v45, %v762_v40  ;;  %v850_v43 = vmul.f32 %v2925_v49, %v762_v40  ;;  %v851_v53 = vmul.f32 %v2919_v44, %v762_v40 }
 0x5df   :  { %v852_v54 = vmul.f32 %v2927_v51, %v762_v40  ;;  %v3312_v40 = vld [vmem:[#allocation14_spill] sm:$0xff] }
 0x5e0   :  { %v3012_v56 = vadd.f32 %v853_v48, %v2942_v28  ;;  %v3015_v58 = vadd.f32 %v849_v50, %v2944_v29  ;;  %v3018_v60 = vadd.f32 %v850_v43, %v2946_v30  ;;  %v3021_v27 = vadd.f32 %v851_v53, %v2948_v32 }
 0x5e1   :  { %v3024_v45 = vadd.f32 %v852_v54, %v2950_v31 }
 0x5e2   :  { %v879_v44 = vpack.c.bf16 %v3015_v58, %v3015_v58 }
 0x5e4   :  { %913 = vmatmul.mubr.bf16.vlgmr.msra.gmra.mrb[12].mxu0 %v879_v44  ;;  %v3082_v44 = vld [vmem:[#allocation6] ss:$8 sps:$4 sm:$0xff]  }
 0x5e5   :  { %1101 = vmatpush1.bf16.msra.mxu0 %v2657_v2  ;;  %1132 = vmatprep.mubr.bf16.mxu0 %v3310_v55  ;;  %v876_v2 = vld [vmem:[#allocation3 + $0x48] sm:$0xff] }
 0x5e6   :  { %1102 = vmatprep.subr.bf16.mxu0 %v2660_v3 }
 0x5e9   :  { %1103 = vmatpush1.bf16.msra.mxu0 %v2663_v4 }
 0x5ea   :  { %1104 = vmatprep.subr.bf16.mxu0 %v2666_v5 }
 0x5ed   :  { %1105 = vmatpush1.bf16.msra.mxu0 %v2669_v6 }
 0x5ee   :  { %1106 = vmatprep.subr.bf16.mxu0 %v2672_v7 }
 0x5f1   :  { %1107 = vmatpush1.bf16.msra.mxu0 %v2674_v8 }
 0x5f2   :  { %1108 = vmatprep.subr.bf16.mxu0 %v2676_v9 }
 0x5f5   :  { %1109 = vmatpush1.bf16.msra.mxu0 %v2680_v10 }
 0x5f6   :  { %1110 = vmatprep.subr.bf16.mxu0 %v2684_v11 }
 0x5f9   :  { %1111 = vmatpush1.bf16.msra.mxu0 %v2687_v12 }
 0x5fa   :  { %1112 = vmatprep.subr.bf16.mxu0 %v2690_v13 }
 0x5fd   :  { %1113 = vmatpush1.bf16.msra.mxu0 %v2693_v14 }
 0x5fe   :  { %1114 = vmatprep.subr.bf16.mxu0 %v2696_v15 }
 0x601   :  { %1115 = vmatpush1.bf16.msra.mxu0 %v2699_v16 }
 0x602   :  { %1320 = vmatprep.subr.bf16.mxu0 %v2655_v1  ;;  %v877_v1 = vld [vmem:[#allocation3 + $0x50] sm:$0xff] }
 0x6b7   :  { %v914_v3 = vpop.f32.mrb[12].mxu0 }
 0x6b8   :  { %v921_v4 = vadd.f32 %v914_v3, %v876_v2  ;;  %v916_v5 = vpop.f32.mrb[13].mxu0  ;;  %v3101_v2 = vld [vmem:[#allocation6 + $0x30] ss:$8 sps:$4 sm:$0xff]   ;;  %v3104_v3 = vld [vmem:[#allocation6 + $0x44] ss:$8 sps:$4 sm:$0xff]  }
 0x6b9   :  { %v918_v6 = vpop.f32.mrb[14].mxu0  ;;  %v922_v30 = vadd.f32 %v916_v5, %v877_v1  ;;  %v1096_v5 = vld [vmem:[#allocation3 + $0x60] sm:$0xff] }
 0x6ba   :  { %v2049_v7 = vmul.f32 -1.442695, %v921_v4  ;;  %v919_v8 = vpop.f32.mrb[15].mxu0  ;;  %v3114_v4 = vld [vmem:[#allocation6 + $0x4] ss:$8 sps:$4 sm:$0xff]  }
 0x6bb   :  { %v2050_v32 = vmul.f32 -1.442695, %v922_v30 }
 0x6bc   :  { %2446 = vpow2.f32 %v2049_v7 }
 0x6c6   :  { %v2447_v9 = vpop.eup %2446 }
 0x6c7   :  { %v929_v49 = vadd.f32 1.0, %v2447_v9 }
 0x6c9   :  { %2448 = vrcp.f32 %v929_v49 }
 0x6ca   :  { %2450 = vpow2.f32 %v2050_v32 }
 0x6d3   :  { %v2449_v51 = vpop.eup %2448 }
 0x6d4   :  { %v935_v28 = vmul.f32 %v2449_v51, %v3015_v58  ;;  %v2451_v31 = vpop.eup %2450 }
 0x6d5   :  { %v930_v42 = vadd.f32 1.0, %v2451_v31 }
 0x6d6   :  { %v936_v29 = vpack.c.bf16 %v935_v28, %v935_v28 }
 0x6d7   :  { %2452 = vrcp.f32 %v930_v42 }
 0x6d8   :  { %2258 = vmatmul.mubr.bf16.vlgmr.msra.gmra.mrb[12].mxu1 %v936_v29 }
 0x6d9   :  { %2262 = vmatpush3.bf16.msra.mxu1 %v2724_v18  ;;  %2277 = vmatprep.mubr.msk.bf16.mxu1 %vm2601_vm0, %v3311_v0 }
 0x6da   :  { %2263 = vmatprep.subr.bf16.mxu1 %v3311_v0 }
 0x6dd   :  { %2264 = vmatpush3.bf16.msra.mxu1 %v2732_v20 }
 0x6de   :  { %2265 = vmatprep.subr.bf16.mxu1 %v3311_v0 }
 0x6e1   :  { %2266 = vmatpush3.bf16.msra.mxu1 %v2739_v21  ;;  %v2453_v33 = vpop.eup %2452 }
 0x6e2   :  { %2267 = vmatprep.subr.bf16.mxu1 %v3311_v0  ;;  %v979_v19 = vsub.f32 1.0, %v2453_v33 }
 0x6e4   :  { %v980_v62 = vmul.f32 %v979_v19, %v3015_v58 }
 0x6e5   :  { %2268 = vmatpush3.bf16.msra.mxu1 %v2746_v22 }
 0x6e6   :  { %2269 = vmatprep.subr.bf16.mxu1 %v3311_v0 }
 0x6e9   :  { %2270 = vmatpush3.bf16.msra.mxu1 %v2753_v23 }
 0x6ea   :  { %2271 = vmatprep.subr.bf16.mxu1 %v3311_v0 }
 0x6ed   :  { %2272 = vmatpush3.bf16.msra.mxu1 %v2760_v24 }
 0x6ee   :  { %2273 = vmatprep.subr.bf16.mxu1 %v3311_v0 }
 0x6f1   :  { %2274 = vmatpush3.bf16.msra.mxu1 %v2767_v25 }
 0x6f2   :  { %2275 = vmatprep.subr.bf16.mxu1 %v3311_v0 }
 0x6f5   :  { %2276 = vmatpush3.bf16.msra.mxu1 %v2774_v26 }
 0x6f6   :  { %2281 = vmatprep.subr.bf16.mxu1 %v3311_v0 }
 0x7ab   :  { %v971_v63 = vpop.f32.mrb[12].mxu1 }
 0x7ac   :  { %v977_v52 = vadd.f32 %v971_v63, %v878_v57  ;;  %v2259_v17 = vpop.f32.mrb[13].mxu1  ;;  %v1279_v57 = vpop.permute.xlu1 %1278  ;;  %v3313_v63 = vld [vmem:[#allocation12_spill] sm:$0xff] }
 0x7ad   :  { %v974_v34 = vpop.f32.mrb[14].mxu1  ;;  %v3314_v17 = vld [vmem:[#allocation13_spill] sm:$0xff] }
 0x7ae   :  { %2454 = vtanh.f32 %v977_v52  ;;  %v2260_v39 = vpop.f32.mrb[15].mxu1 }
 0x7b8   :  { %v2455_v47 = vpop.eup %2454 }
 0x7b9   :  { %v981_v36 = vmul.f32 %v2455_v47, %v2453_v33 }
 0x7bb   :  { %v982_v35 = vadd.f32 %v981_v36, %v980_v62  ;;  %v3159_v36 = vld [vmem:[#allocation6 + $0x40] ss:$8 sps:$4 sm:$0xff]  }
 0x7bd   :  { %v1070_v37 = vmul.f32 %v2917_v41, %v982_v35  ;;  %v1071_v46 = vmul.f32 %v3312_v40, %v982_v35  ;;  %v1072_v48 = vmul.f32 %v3002_v61, %v982_v35  ;;  %v1073_v50 = vmul.f32 %v1059_v38, %v982_v35  ;;  %v3086_v61 = vld [vmem:[#allocation6 + $0x14] ss:$8 sps:$4 sm:$0xff]   ;;  %v3165_v38 = vld [vmem:[#allocation6 + $0x50] ss:$8 sps:$4 sm:$0xff]   ;;  %v3171_v40 = vld [vmem:[#allocation6 + $0x60] ss:$8 sps:$4 sm:$0xff]  }
 0x7be   :  { %v3162_v35 = vld [vmem:[#allocation6 + $0x54] ss:$8 sps:$4 sm:$0xff]  }
 0x7bf   :  { %v3069_v43 = vadd.f32 %v1070_v37, %v3018_v60  ;;  %v3072_v53 = vadd.f32 %v1071_v46, %v3021_v27  ;;  %v3075_v54 = vadd.f32 %v1072_v48, %v3024_v45  ;;  %v3078_v58 = vadd.f32 %v1073_v50, %v3012_v56  ;;  %v3089_v60 = vld [vmem:[#allocation6 + $0x10] ss:$8 sps:$4 sm:$0xff]   ;;  %v3092_v56 = vld [vmem:[#allocation6 + $0x24] ss:$8 sps:$4 sm:$0xff]   ;;  %v3095_v27 = vld [vmem:[#allocation6 + $0x20] ss:$8 sps:$4 sm:$0xff]  }
 0x7c0   :  { %v3098_v45 = vld [vmem:[#allocation6 + $0x34] ss:$8 sps:$4 sm:$0xff]   ;;  %v3168_v37 = vld [vmem:[#allocation6 + $0x64] ss:$8 sps:$4 sm:$0xff]   ;;  %v3177_v48 = vld [vmem:[#allocation6 + $0x70] ss:$8 sps:$4 sm:$0xff]  }
 0x7c1   :  { %v1099_v41 = vpack.c.bf16 %v3069_v43, %v3069_v43  ;;  %v3174_v46 = vld [vmem:[#allocation6 + $0x74] ss:$8 sps:$4 sm:$0xff]  }
 0x7c2   :  { %v1316_v50 = vld [vmem:[#allocation3 + $0x78] sm:$0xff] }
 0x7c3   :  { %1133 = vmatmul.mubr.bf16.vlgmr.msra.gmra.mrb[16].mxu0 %v1099_v41 }
 0x7c4   :  { %1321 = vmatpush1.bf16.msra.mxu0 %v3082_v44  ;;  %1352 = vmatprep.mubr.bf16.mxu0 %v3310_v55 }
 0x7c5   :  { %1322 = vmatprep.subr.bf16.mxu0 %v3086_v61 }
 0x7c8   :  { %1323 = vmatpush1.bf16.msra.mxu0 %v3089_v60 }
 0x7c9   :  { %1324 = vmatprep.subr.bf16.mxu0 %v3092_v56 }
 0x7cc   :  { %1325 = vmatpush1.bf16.msra.mxu0 %v3095_v27 }
 0x7cd   :  { %1326 = vmatprep.subr.bf16.mxu0 %v3098_v45 }
 0x7d0   :  { %1327 = vmatpush1.bf16.msra.mxu0 %v3101_v2 }
 0x7d1   :  { %1328 = vmatprep.subr.bf16.mxu0 %v3104_v3 }
 0x7d4   :  { %1329 = vmatpush1.bf16.msra.mxu0 %v2680_v10 }
 0x7d5   :  { %1330 = vmatprep.subr.bf16.mxu0 %v2684_v11 }
 0x7d8   :  { %1331 = vmatpush1.bf16.msra.mxu0 %v2687_v12 }
 0x7d9   :  { %1332 = vmatprep.subr.bf16.mxu0 %v2690_v13 }
 0x7dc   :  { %1333 = vmatpush1.bf16.msra.mxu0 %v2693_v14 }
 0x7dd   :  { %1334 = vmatprep.subr.bf16.mxu0 %v2696_v15 }
 0x7e0   :  { %1335 = vmatpush1.bf16.msra.mxu0 %v2699_v16  ;;  %v1097_v16 = vld [vmem:[#allocation3 + $0x68] sm:$0xff] }
 0x7e1   :  { %1540 = vmatprep.subr.bf16.mxu0 %v3114_v4 }
 0x896   :  { %v1134_v6 = vpop.f32.mrb[16].mxu0 }
 0x897   :  { %v1141_v7 = vadd.f32 %v1134_v6, %v1096_v5  ;;  %v1136_v10 = vpop.f32.mrb[17].mxu0 }
 0x898   :  { %v1138_v8 = vpop.f32.mrb[18].mxu0 }
 0x899   :  { %v2061_v11 = vmul.f32 -1.442695, %v1141_v7  ;;  %v1139_v9 = vpop.f32.mrb[19].mxu0 }
 0x89a   :  { %v3194_v9 = vld [vmem:[%s3301_s3 + $0x8] sm:$0xff]  }
 0x89b   :  { %2456 = vpow2.f32 %v2061_v11 }
 0x8a5   :  { %v2457_v12 = vpop.eup %2456 }
 0x8a6   :  { %v1149_v13 = vadd.f32 1.0, %v2457_v12  ;;  %v3201_v12 = vld [vmem:[%s3301_s3 + $0x10] sm:$0xff]  }
 0x8a8   :  { %2458 = vrcp.f32 %v1149_v13  ;;  %v3208_v13 = vld [vmem:[%s3301_s3 + $0x18] sm:$0xff]  }
 0x8b2   :  { %v2459_v14 = vpop.eup %2458 }
 0x8b3   :  { %v1155_v15 = vmul.f32 %v2459_v14, %v3069_v43  ;;  %v3215_v14 = vld [vmem:[%s3301_s3 + $0x20] sm:$0xff]  }
 0x8b5   :  { %v1156_v49 = vpack.c.bf16 %v1155_v15, %v1155_v15  ;;  %v3222_v15 = vld [vmem:[%s3301_s3 + $0x28] sm:$0xff]  }
 0x8b7   :  { %2278 = vmatmul.mubr.bf16.vlgmr.msra.gmra.mrb[16].mxu1 %v1156_v49  ;;  %v3229_v49 = vld [vmem:[%s3301_s3 + $0x30] sm:$0xff]  }
 0x8b8   :  { %2282 = vmatpush3.bf16.msra.mxu1 %v2724_v18  ;;  %2297 = vmatprep.mubr.msk.bf16.mxu1 %vm2601_vm0, %v3311_v0  ;;  %v1142_v18 = vadd.f32 %v1136_v10, %v1097_v16  ;;  %v3236_v16 = vld [vmem:[%s3301_s3 + $0x38] sm:$0xff]  }
 0x8b9   :  { %2283 = vmatprep.subr.bf16.mxu1 %v3311_v0 }
 0x8bc   :  { %2284 = vmatpush3.bf16.msra.mxu1 %v2732_v20  ;;  %v2062_v20 = vmul.f32 -1.442695, %v1142_v18  ;;  %v1317_v18 = vld [vmem:[#allocation3 + $0x80] sm:$0xff] }
 0x8bd   :  { %2285 = vmatprep.subr.bf16.mxu1 %v3311_v0 }
 0x8be   :  { %2460 = vpow2.f32 %v2062_v20 }
 0x8c0   :  { %2286 = vmatpush3.bf16.msra.mxu1 %v2739_v21 }
 0x8c1   :  { %2287 = vmatprep.subr.bf16.mxu1 %v3311_v0 }
 0x8c4   :  { %2288 = vmatpush3.bf16.msra.mxu1 %v2746_v22 }
 0x8c5   :  { %2289 = vmatprep.subr.bf16.mxu1 %v3311_v0 }
 0x8c8   :  { %2290 = vmatpush3.bf16.msra.mxu1 %v2753_v23  ;;  %v2461_v21 = vpop.eup %2460  ;;  %v1098_v23 = vld [vmem:[#allocation3 + $0x70] sm:$0xff] }
 0x8c9   :  { %2291 = vmatprep.subr.bf16.mxu1 %v3311_v0  ;;  %v1150_v22 = vadd.f32 1.0, %v2461_v21 }
 0x8cb   :  { %2462 = vrcp.f32 %v1150_v22 }
 0x8cc   :  { %2292 = vmatpush3.bf16.msra.mxu1 %v2760_v24 }
 0x8cd   :  { %2293 = vmatprep.subr.bf16.mxu1 %v3311_v0 }
 0x8d0   :  { %2294 = vmatpush3.bf16.msra.mxu1 %v2767_v25 }
 0x8d1   :  { %2295 = vmatprep.subr.bf16.mxu1 %v3311_v0 }
 0x8d4   :  { %2296 = vmatpush3.bf16.msra.mxu1 %v2774_v26 }
 0x8d5   :  { %2301 = vmatprep.subr.bf16.mxu1 %v3311_v0  ;;  %v2463_v1 = vpop.eup %2462 }
 0x8d6   :  { %v1199_v30 = vsub.f32 1.0, %v2463_v1 }
 0x8d8   :  { %v1200_v26 = vmul.f32 %v1199_v30, %v3069_v43 }
 0x98a   :  { %v1191_v51 = vpop.f32.mrb[16].mxu1 }
 0x98b   :  { %v1197_v24 = vadd.f32 %v1191_v51, %v1098_v23  ;;  %v2279_v28 = vpop.f32.mrb[17].mxu1  ;;  %v1318_v51 = vld [vmem:[#allocation3 + $0x88] sm:$0xff] }
 0x98c   :  { %v1194_v29 = vpop.f32.mrb[18].mxu1 }
 0x98d   :  { %2464 = vtanh.f32 %v1197_v24  ;;  %v2280_v25 = vpop.f32.mrb[19].mxu1 }
 0x997   :  { %v2465_v32 = vpop.eup %2464 }
 0x998   :  { %v1201_v31 = vmul.f32 %v2465_v32, %v2463_v1 }
 0x99a   :  { %v1202_v42 = vadd.f32 %v1201_v31, %v1200_v26 }
 0x99c   :  { %v1291_v52 = vmul.f32 %v3313_v63, %v1202_v42  ;;  %v1292_v34 = vmul.f32 %v3314_v17, %v1202_v42  ;;  %v1293_v39 = vmul.f32 %v1279_v57, %v1202_v42  ;;  %v1499_v63 = vpop.permute.xlu0 %1498 }
 0x99e   :  { %v3140_v33 = vadd.f32 %v1291_v52, %v3072_v53  ;;  %v3143_v19 = vadd.f32 %v1292_v34, %v3075_v54  ;;  %v3146_v47 = vadd.f32 %v1293_v39, %v3078_v58 }
 0x9a0   :  { %v1319_v62 = vpack.c.bf16 %v3140_v33, %v3140_v33 }
 0x9a2   :  { %1353 = vmatmul.mubr.bf16.vlgmr.msra.gmra.mrb[20].mxu0 %v1319_v62 }
 0x9a3   :  { %1541 = vmatpush1.bf16.msra.mxu0 %v3082_v44  ;;  %1572 = vmatprep.mubr.bf16.mxu0 %v3310_v55 }
 0x9a4   :  { %1542 = vmatprep.subr.bf16.mxu0 %v3086_v61 }
 0x9a7   :  { %1543 = vmatpush1.bf16.msra.mxu0 %v3089_v60 }
 0x9a8   :  { %1544 = vmatprep.subr.bf16.mxu0 %v3092_v56 }
 0x9ab   :  { %1545 = vmatpush1.bf16.msra.mxu0 %v3095_v27 }
 0x9ac   :  { %1546 = vmatprep.subr.bf16.mxu0 %v3098_v45 }
 0x9af   :  { %1547 = vmatpush1.bf16.msra.mxu0 %v3101_v2 }
 0x9b0   :  { %1548 = vmatprep.subr.bf16.mxu0 %v3104_v3 }
 0x9b3   :  { %1549 = vmatpush1.bf16.msra.mxu0 %v3159_v36 }
 0x9b4   :  { %1550 = vmatprep.subr.bf16.mxu0 %v3162_v35 }
 0x9b7   :  { %1551 = vmatpush1.bf16.msra.mxu0 %v3165_v38 }
 0x9b8   :  { %1552 = vmatprep.subr.bf16.mxu0 %v3168_v37 }
 0x9bb   :  { %1553 = vmatpush1.bf16.msra.mxu0 %v3171_v40 }
 0x9bc   :  { %1554 = vmatprep.subr.bf16.mxu0 %v3174_v46 }
 0x9bf   :  { %1555 = vmatpush1.bf16.msra.mxu0 %v3177_v48 }
 0x9c0   :  { %1760 = vmatprep.subr.bf16.mxu0 %v3114_v4  ;;  %v3185_v4 = vld [vmem:[%s3301_s3] sm:$0xff]   ;;  %s2602_s3 = smov [#allocation8]  }
 0x9c1   :  { %s1980_s6 = sshll.u32 %s2602_s3, 4  ;;  %s1981_s6 = int_to_ptr.vmem [resolvable:$true] %s1980_s6 }
 0x9c2   :  { %s2564_s7 = scalar_lea.vmem %s1981_s6, 128  ;;  %p2569_p3 = scmp.lt.s32.totalorder %s1981_s6, %s1981_s6 }
 0x9c3   :  { %p2565_p2 = scmp.ne.s32.totalorder %s1981_s6, %s2564_s7  ;;  %p2570_p4 = scmp.lt.s32.totalorder %s2564_s7, %s2564_s7 }
 0x9c5   :  { %p2571_p5 = por %p2570_p4, %p2569_p3 }
 0x9c7   :  { %p2572_p6 = pnand %p2571_p5, %p2565_p2 }
 0xa75   :  { %v1354_v43 = vpop.f32.mrb[20].mxu0 }
 0xa76   :  { %v1361_v53 = vadd.f32 %v1354_v43, %v1316_v50  ;;  %v1356_v54 = vpop.f32.mrb[21].mxu0 }
 0xa77   :  { %v1358_v58 = vpop.f32.mrb[22].mxu0  ;;  %v1362_v20 = vadd.f32 %v1356_v54, %v1317_v18 }
 0xa78   :  { %v2073_v41 = vmul.f32 -1.442695, %v1361_v53  ;;  %v1359_v5 = vpop.f32.mrb[23].mxu0 }
 0xa79   :  { %v2074_v21 = vmul.f32 -1.442695, %v1362_v20 }
 0xa7a   :  { %2466 = vpow2.f32 %v2073_v41 }
 0xa84   :  { %v2467_v6 = vpop.eup %2466 }
 0xa85   :  { %v1369_v7 = vadd.f32 1.0, %v2467_v6 }
 0xa87   :  { %2468 = vrcp.f32 %v1369_v7  ;;  %v1719_v7 = vpop.permute.xlu1 %1718 }
 0xa88   :  { %2470 = vpow2.f32 %v2074_v21 }
 0xa91   :  { %v2469_v10 = vpop.eup %2468 }
 0xa92   :  { %v1375_v8 = vmul.f32 %v2469_v10, %v3140_v33  ;;  %v2471_v22 = vpop.eup %2470 }
 0xa93   :  { %v1370_v23 = vadd.f32 1.0, %v2471_v22 }
 0xa94   :  { %v1376_v11 = vpack.c.bf16 %v1375_v8, %v1375_v8 }
 0xa95   :  { %2472 = vrcp.f32 %v1370_v23  ;;  %v1757_v23 = vld [vmem:[#allocation3 + $0xb0] sm:$0xff] }
 0xa96   :  { %2298 = vmatmul.mubr.bf16.vlgmr.msra.gmra.mrb[20].mxu1 %v1376_v11 }
 0xa97   :  { %2302 = vmatpush3.bf16.msra.mxu1 %v3185_v4  ;;  %2317 = vmatprep.mubr.msk.bf16.mxu1 %vm2601_vm0, %v3311_v0 }
 0xa98   :  { %2303 = vmatprep.subr.bf16.mxu1 %v3311_v0 }
 0xa9b   :  { %2304 = vmatpush3.bf16.msra.mxu1 %v3194_v9 }
 0xa9c   :  { %2305 = vmatprep.subr.bf16.mxu1 %v3311_v0 }
 0xa9f   :  { %2306 = vmatpush3.bf16.msra.mxu1 %v3201_v12  ;;  %v2473_v30 = vpop.eup %2472 }
 0xaa0   :  { %2307 = vmatprep.subr.bf16.mxu1 %v3311_v0  ;;  %v1419_v32 = vsub.f32 1.0, %v2473_v30 }
 0xaa2   :  { %v1420_v31 = vmul.f32 %v1419_v32, %v3140_v33 }
 0xaa3   :  { %2308 = vmatpush3.bf16.msra.mxu1 %v3208_v13 }
 0xaa4   :  { %2309 = vmatprep.subr.bf16.mxu1 %v3311_v0 }
 0xaa7   :  { %2310 = vmatpush3.bf16.msra.mxu1 %v3215_v14 }
 0xaa8   :  { %2311 = vmatprep.subr.bf16.mxu1 %v3311_v0 }
 0xaab   :  { %2312 = vmatpush3.bf16.msra.mxu1 %v3222_v15 }
 0xaac   :  { %2313 = vmatprep.subr.bf16.mxu1 %v3311_v0 }
 0xaaf   :  { %2314 = vmatpush3.bf16.msra.mxu1 %v3229_v49 }
 0xab0   :  { %2315 = vmatprep.subr.bf16.mxu1 %v3311_v0 }
 0xab3   :  { %2316 = vmatpush3.bf16.msra.mxu1 %v3236_v16 }
 0xab4   :  { %2321 = vmatprep.subr.bf16.mxu1 %v3311_v0 }
 0xb69   :  { %v1411_v24 = vpop.f32.mrb[20].mxu1 }
 0xb6a   :  { %v1417_v28 = vadd.f32 %v1411_v24, %v1318_v51  ;;  %v2299_v29 = vpop.f32.mrb[21].mxu1 }
 0xb6b   :  { %v1414_v25 = vpop.f32.mrb[22].mxu1 }
 0xb6c   :  { %2474 = vtanh.f32 %v1417_v28  ;;  %v2300_v1 = vpop.f32.mrb[23].mxu1  ;;  %v1758_v25 = vld [vmem:[#allocation3 + $0xb8] sm:$0xff] }
 0xb76   :  { %v2475_v26 = vpop.eup %2474 }
 0xb77   :  { %v1421_v42 = vmul.f32 %v2475_v26, %v2473_v30 }
 0xb79   :  { %v1422_v57 = vadd.f32 %v1421_v42, %v1420_v31 }
 0xb7b   :  { %v1512_v52 = vmul.f32 %v3004_v59, %v1422_v57  ;;  %v1513_v17 = vmul.f32 %v1499_v63, %v1422_v57 }
 0xb7d   :  { %v3243_v34 = vadd.f32 %v1512_v52, %v3143_v19  ;;  %v3246_v39 = vadd.f32 %v1513_v17, %v3146_v47  ;;  %v1537_v47 = vld [vmem:[#allocation3 + $0x98] sm:$0xff] }
 0xb7f   :  { %v1539_v62 = vpack.c.bf16 %v3243_v34, %v3243_v34 }
 0xb81   :  { %1573 = vmatmul.mubr.bf16.vlgmr.msra.gmra.mrb[24].mxu0 %v1539_v62 }
 0xb82   :  { %1761 = vmatpush1.bf16.msra.mxu0 %v3082_v44  ;;  %1792 = vmatprep.mubr.bf16.mxu0 %v3310_v55  ;;  %v1536_v55 = vld [vmem:[#allocation3 + $0x90] sm:$0xff] }
 0xb83   :  { %1762 = vmatprep.subr.bf16.mxu0 %v3086_v61 }
 0xb86   :  { %1763 = vmatpush1.bf16.msra.mxu0 %v3089_v60 }
 0xb87   :  { %1764 = vmatprep.subr.bf16.mxu0 %v3092_v56 }
 0xb8a   :  { %1765 = vmatpush1.bf16.msra.mxu0 %v3095_v27 }
 0xb8b   :  { %1766 = vmatprep.subr.bf16.mxu0 %v3098_v45 }
 0xb8e   :  { %1767 = vmatpush1.bf16.msra.mxu0 %v3101_v2 }
 0xb8f   :  { %1768 = vmatprep.subr.bf16.mxu0 %v3104_v3 }
 0xb92   :  { %1769 = vmatpush1.bf16.msra.mxu0 %v3159_v36 }
 0xb93   :  { %1770 = vmatprep.subr.bf16.mxu0 %v3162_v35 }
 0xb96   :  { %1771 = vmatpush1.bf16.msra.mxu0 %v3165_v38 }
 0xb97   :  { %1772 = vmatprep.subr.bf16.mxu0 %v3168_v37 }
 0xb9a   :  { %1773 = vmatpush1.bf16.msra.mxu0 %v3171_v40  ;;  %v1538_v40 = vld [vmem:[#allocation3 + $0xa0] sm:$0xff] }
 0xb9b   :  { %1774 = vmatprep.subr.bf16.mxu0 %v3174_v46 }
 0xb9e   :  { %1775 = vmatpush1.bf16.msra.mxu0 %v3177_v48 }
 0xc54   :  { %v1574_v59 = vpop.f32.mrb[24].mxu0 }
 0xc55   :  { %v1581_v44 = vadd.f32 %v1574_v59, %v1536_v55  ;;  %v1576_v61 = vpop.f32.mrb[25].mxu0 }
 0xc56   :  { %v1578_v60 = vpop.f32.mrb[26].mxu0  ;;  %v1582_v36 = vadd.f32 %v1576_v61, %v1537_v47 }
 0xc57   :  { %v2085_v56 = vmul.f32 -1.442695, %v1581_v44  ;;  %v1579_v27 = vpop.f32.mrb[27].mxu0 }
 0xc58   :  { %v2086_v35 = vmul.f32 -1.442695, %v1582_v36 }
 0xc59   :  { %2476 = vpow2.f32 %v2085_v56 }
 0xc63   :  { %v2477_v45 = vpop.eup %2476 }
 0xc64   :  { %v1589_v2 = vadd.f32 1.0, %v2477_v45 }
 0xc66   :  { %2478 = vrcp.f32 %v1589_v2 }
 0xc67   :  { %2480 = vpow2.f32 %v2086_v35 }
 0xc70   :  { %v2479_v3 = vpop.eup %2478 }
 0xc71   :  { %v1595_v33 = vmul.f32 %v2479_v3, %v3243_v34  ;;  %v2481_v38 = vpop.eup %2480 }
 0xc72   :  { %v1590_v37 = vadd.f32 1.0, %v2481_v38 }
 0xc73   :  { %v1596_v19 = vpack.c.bf16 %v1595_v33, %v1595_v33 }
 0xc74   :  { %2482 = vrcp.f32 %v1590_v37 }
 0xc75   :  { %2318 = vmatmul.mubr.bf16.vlgmr.msra.gmra.mrb[24].mxu1 %v1596_v19 }
 0xc76   :  { %2322 = vmatpush3.bf16.msra.mxu1 %v3185_v4  ;;  %2337 = vmatprep.mubr.msk.bf16.mxu1 %vm2601_vm0, %v3311_v0  ;;  %v1756_v4 = vld [vmem:[#allocation3 + $0xa8] sm:$0xff] }
 0xc77   :  { %2323 = vmatprep.subr.bf16.mxu1 %v3311_v0 }
 0xc7a   :  { %2324 = vmatpush3.bf16.msra.mxu1 %v3194_v9 }
 0xc7b   :  { %2325 = vmatprep.subr.bf16.mxu1 %v3311_v0 }
 0xc7e   :  { %2326 = vmatpush3.bf16.msra.mxu1 %v3201_v12  ;;  %v2483_v54 = vpop.eup %2482 }
 0xc7f   :  { %2327 = vmatprep.subr.bf16.mxu1 %v3311_v0  ;;  %v1639_v58 = vsub.f32 1.0, %v2483_v54 }
 0xc82   :  { %2328 = vmatpush3.bf16.msra.mxu1 %v3208_v13 }
 0xc83   :  { %2329 = vmatprep.subr.bf16.mxu1 %v3311_v0 }
 0xc86   :  { %2330 = vmatpush3.bf16.msra.mxu1 %v3215_v14 }
 0xc87   :  { %2331 = vmatprep.subr.bf16.mxu1 %v3311_v0 }
 0xc8a   :  { %2332 = vmatpush3.bf16.msra.mxu1 %v3222_v15 }
 0xc8b   :  { %2333 = vmatprep.subr.bf16.mxu1 %v3311_v0 }
 0xc8e   :  { %2334 = vmatpush3.bf16.msra.mxu1 %v3229_v49 }
 0xc8f   :  { %2335 = vmatprep.subr.bf16.mxu1 %v3311_v0  ;;  %v1640_v0 = vmul.f32 %v1639_v58, %v3243_v34 }
 0xc92   :  { %2336 = vmatpush3.bf16.msra.mxu1 %v3236_v16 }
 0xd48   :  { %v1631_v46 = vpop.f32.mrb[24].mxu1 }
 0xd49   :  { %v1637_v48 = vadd.f32 %v1631_v46, %v1538_v40  ;;  %v2319_v50 = vpop.f32.mrb[25].mxu1 }
 0xd4a   :  { %v1634_v43 = vpop.f32.mrb[26].mxu1 }
 0xd4b   :  { %2484 = vtanh.f32 %v1637_v48  ;;  %v2320_v53 = vpop.f32.mrb[27].mxu1 }
 0xd55   :  { %v2485_v41 = vpop.eup %2484 }
 0xd56   :  { %v1641_v5 = vmul.f32 %v2485_v41, %v2483_v54 }
 0xd58   :  { %v1642_v6 = vadd.f32 %v1641_v5, %v1640_v0 }
 0xd5a   :  { %v1733_v10 = vmul.f32 %v1719_v7, %v1642_v6 }
 0xd5c   :  { %v1742_v8 = vadd.f32 %v1733_v10, %v3246_v39 }
 0xd5e   :  { %v1759_v11 = vpack.c.bf16 %v1742_v8, %v1742_v8 }
 0xd60   :  { %1793 = vmatmul.mubr.bf16.vlgmr.msra.gmra.mrb[28].mxu0 %v1759_v11 }
 0xe33   :  { %v1794_v9 = vpop.f32.mrb[28].mxu0 }
 0xe34   :  { %v1801_v12 = vadd.f32 %v1794_v9, %v1756_v4  ;;  %v1796_v13 = vpop.f32.mrb[29].mxu0 }
 0xe35   :  { %v1798_v14 = vpop.f32.mrb[30].mxu0  ;;  %v1802_v51 = vadd.f32 %v1796_v13, %v1757_v23 }
 0xe36   :  { %v2097_v15 = vmul.f32 -1.442695, %v1801_v12  ;;  %v1799_v49 = vpop.f32.mrb[31].mxu0 }
 0xe37   :  { %v2098_v24 = vmul.f32 -1.442695, %v1802_v51 }
 0xe38   :  { %2486 = vpow2.f32 %v2097_v15 }
 0xe42   :  { %v2487_v16 = vpop.eup %2486 }
 0xe43   :  { %v1809_v18 = vadd.f32 1.0, %v2487_v16 }
 0xe45   :  { %2488 = vrcp.f32 %v1809_v18 }
 0xe46   :  { %2490 = vpow2.f32 %v2098_v24 }
 0xe4f   :  { %v2489_v20 = vpop.eup %2488 }
 0xe50   :  { %v1815_v21 = vmul.f32 %v2489_v20, %v1742_v8  ;;  %v2491_v28 = vpop.eup %2490 }
 0xe51   :  { %v1810_v29 = vadd.f32 1.0, %v2491_v28 }
 0xe52   :  { %v1816_v22 = vpack.c.bf16 %v1815_v21, %v1815_v21 }
 0xe53   :  { %2492 = vrcp.f32 %v1810_v29 }
 0xe54   :  { %2338 = vmatmul.mubr.bf16.vlgmr.msra.gmra.mrb[28].mxu1 %v1816_v22 }
 0xe5d   :  { %v2493_v42 = vpop.eup %2492 }
 0xe5e   :  { %v1859_v57 = vsub.f32 1.0, %v2493_v42 }
 0xe60   :  { %v1860_v52 = vmul.f32 %v1859_v57, %v1742_v8 }
 0xf27   :  { %v1851_v1 = vpop.f32.mrb[28].mxu1 }
 0xf28   :  { %v1857_v30 = vadd.f32 %v1851_v1, %v1758_v25  ;;  %v2339_v32 = vpop.f32.mrb[29].mxu1 }
 0xf29   :  { %v1854_v26 = vpop.f32.mrb[30].mxu1 }
 0xf2a   :  { %2494 = vtanh.f32 %v1857_v30  ;;  %v2340_v31 = vpop.f32.mrb[31].mxu1 }
 0xf34   :  { %v2495_v63 = vpop.eup %2494 }
 0xf35   :  { %v1861_v17 = vmul.f32 %v2495_v63, %v2493_v42 }
 0xf37   :  { %v1862_v34 = vadd.f32 %v1861_v17, %v1860_v52 }
 0xf39   :  { %1973 = vst [vmem:[#allocation8] sm:$0xff] %v1862_v34 }
 0xf3a   :  { %2575 = shalt.err (!%p2572_p6)
}
 0xf3b   :  { %s2576_s10 = scalar_lea.hbm %s3302_s4, 128 }
 0xf3c   :  { %p2577_p7 = scmp.ne.s32.totalorder %s3302_s4, %s2576_s10  ;;  %p2580_p8 = scmp.lt.u32.totalorder %s2576_s10, %s3302_s4 }
 0xf3e   :  { %p2582_p9 = pnand %p2580_p8, %p2577_p7 }
 0xf40   :  { %2585 = shalt.err (!%p2582_p9)
}
 0xf41   :  { %1983 = dma.vmem_to_hbm [thread:$0]  %s1981_s6, 128, %s3302_s4, [#allocation5]  }
 0xf42   :  { %2590 = dma.done.wait [#allocation5], 128  }
 0xf43   :  { %2591 = vsyncadd [#allocation5], 4294967168 }
 0xf44   :  { %1987 = vsyncpa [#allocation4], 1 }
 0xf45   :  { %1988 = vsyncpa [#allocation7], 1 }
 0xf46   :  { %1989 = vsyncpa [#allocation5], 1 }

</bundles_post_ra>
